<compile_context>
chip_gen: v5e
topology: v5e:2x2
jax: 0.10.0
libtpu: 0.0.40
codegen_flags: <defaults>
</compile_context>

<pallas_src>
import functools

import jax
import jax.numpy as jnp
from jax.experimental import pallas as pl
from jax.experimental.pallas import tpu as pltpu


# ----------------------------------------------------------------------------
# Kernel 1: embedding lookup + hoisted GRU input projection (both directions)
# ----------------------------------------------------------------------------
def _embed_proj_kernel(ids_ref, table_ref, wih_ref, bias_ref, emb_ref, gates_ref,
                       *, ndir):
    ids = ids_ref[...]                                   # (Np, 1) int32, time-major
    n = ids.shape[0]
    vocab = table_ref.shape[0]
    iota = jax.lax.broadcasted_iota(jnp.int32, (n, vocab), 1)
    one_hot = (ids == iota).astype(jnp.float32)          # (Np, V)
    emb = jnp.dot(one_hot, table_ref[...],
                  preferred_element_type=jnp.float32)    # (Np, E)
    emb_ref[...] = emb
    # Hoisted input projection: one fat MXU matmul per direction, bias folded.
    for d in range(ndir):
        gates_ref[d] = (jnp.dot(emb, wih_ref[d],
                                preferred_element_type=jnp.float32)
                        + bias_ref[d])                   # (Np, 3Hp)


def embed_and_project(ids_flat, table, wih_p, bias_i):
    n = ids_flat.shape[0]
    vocab, embed = table.shape
    ndir, _, g3 = wih_p.shape
    kernel = functools.partial(_embed_proj_kernel, ndir=ndir)
    return pl.pallas_call(
        kernel,
        out_shape=(jax.ShapeDtypeStruct((n, embed), jnp.float32),
                   jax.ShapeDtypeStruct((ndir, n, g3), jnp.float32)),
        in_specs=[pl.BlockSpec((n, 1), lambda: (0, 0)),
                  pl.BlockSpec((vocab, embed), lambda: (0, 0)),
                  pl.BlockSpec((ndir, embed, g3), lambda: (0, 0, 0)),
                  pl.BlockSpec((ndir, 1, g3), lambda: (0, 0, 0))],
        out_specs=(pl.BlockSpec((n, embed), lambda: (0, 0)),
                   pl.BlockSpec((ndir, n, g3), lambda: (0, 0, 0))),
    )(ids_flat, table, wih_p, bias_i)


# ----------------------------------------------------------------------------
# Kernel 2: GRU recurrence — whole time loop inside one invocation per direction
# ----------------------------------------------------------------------------
def _gru_kernel(gates_ref, whh_ref, bhn_ref, h_ref, *, seq_len, hidden):
    d = pl.program_id(0)                 # direction (0 = forward, 1 = backward)
    whh = whh_ref[...]                   # (Hp, 3Hp), gate order r|z|n
    bhn = bhn_ref[...]                   # (1, Hp)
    bp = h_ref.shape[0]

    def step(t, h):
        t_idx = jnp.where(d == 0, t, seq_len - 1 - t)
        gi = gates_ref[t_idx]            # (Bp, 3Hp): x@Wih + (bih + bhh_{r,z})
        gh = jnp.dot(h, whh, preferred_element_type=jnp.float32)    # (Bp, 3Hp)
        # one EUP push for both sigmoids on the packed r|z slice
        rz = jax.nn.sigmoid(gi[:, :2 * hidden] + gh[:, :2 * hidden])
        r = rz[:, :hidden]
        z = rz[:, hidden:]
        n = jnp.tanh(gi[:, 2 * hidden:] + r * (gh[:, 2 * hidden:] + bhn))
        return (1.0 - z) * n + z * h

    h0 = jnp.zeros((bp, hidden), jnp.float32)
    h_ref[...] = jax.lax.fori_loop(0, seq_len, step, h0, unroll=True)


def gru_hidden(gates, whh_p, bhn):
    """gates: (ndir, S, Bp, 3Hp) time-major. Returns final hidden (ndir, Bp, Hp)."""
    ndir, s, bp, g3 = gates.shape
    hp = g3 // 3
    kernel = functools.partial(_gru_kernel, seq_len=s, hidden=hp)
    return pl.pallas_call(
        kernel,
        out_shape=jax.ShapeDtypeStruct((ndir, bp, hp), jnp.float32),
        grid_spec=pltpu.PrefetchScalarGridSpec(
            num_scalar_prefetch=0,
            grid=(ndir,),
            in_specs=[pl.BlockSpec((None, s, bp, g3), lambda d: (d, 0, 0, 0)),
                      pl.BlockSpec((None, hp, g3), lambda d: (d, 0, 0)),
                      pl.BlockSpec((None, 1, hp), lambda d: (d, 0, 0))],
            out_specs=pl.BlockSpec((None, bp, hp), lambda d: (d, 0, 0)),
        ),
        compiler_params=pltpu.CompilerParams(
            dimension_semantics=("parallel",)),   # 2 directions -> 2 TCs on v7x
    )(gates, whh_p, bhn)


# ----------------------------------------------------------------------------
# Encoder forward
# ----------------------------------------------------------------------------
def encoder_forward(sentences, kparams, *, hidden):
    b, s = sentences.shape
    table = kparams["embedding"]
    _, e = table.shape
    ndir, _, g3 = kparams["wih"].shape
    bp = ((b + 7) // 8) * 8                      # pad batch to 8 sublanes

    # Time-major, batch-padded token ids (tiny int32 transpose; no activation
    # transpose / reverse ever touches HBM).
    ids_tm = jnp.transpose(sentences.astype(jnp.int32))          # (S, B)
    ids_tm = jnp.pad(ids_tm, ((0, 0), (0, bp - b)))              # (S, Bp)
    ids_flat = ids_tm.reshape(s * bp, 1)

    emb_tm, gates = embed_and_project(ids_flat, table,
                                      kparams["wih"], kparams["bias_i"])
    # word_embeddings in the module's (B, S, E) layout (required output).
    word_embeddings = jnp.transpose(emb_tm.reshape(s, bp, e)[:, :b, :], (1, 0, 2))

    gates = gates.reshape(ndir, s, bp, g3)                       # free reshape
    h_out = gru_hidden(gates, kparams["whh"], kparams["bhn"])    # (ndir, Bp, Hp)
    h_real = h_out[:, :b, :hidden]                               # (ndir, B, H)
    thought_vectors = jnp.transpose(h_real, (1, 0, 2)).reshape(b, ndir * hidden)
    return word_embeddings, thought_vectors


# ----------------------------------------------------------------------------
# Parameter init (mirrors Encoder._init_weights) and packing/padding
# ----------------------------------------------------------------------------
def init_params(key, vocab, embed, hidden, ndir):
    keys = jax.random.split(key, 1 + 2 * ndir)

    def xavier(k, shape, fan_in, fan_out):
        bound = jnp.sqrt(6.0 / (fan_in + fan_out))
        return jax.random.uniform(k, shape, jnp.float32, -bound, bound)

    params = {"embedding": jax.random.uniform(keys[0], (vocab, embed),
                                              jnp.float32, -0.1, 0.1)}
    wih, whh = [], []
    for d in range(ndir):
        wih.append(xavier(keys[1 + 2 * d], (embed, 3 * hidden), embed, 3 * hidden))
        whh.append(xavier(keys[2 + 2 * d], (hidden, 3 * hidden), hidden, 3 * hidden))
    params["wih"] = jnp.stack(wih)                     # (ndir, E, 3H), gates r,z,n
    params["whh"] = jnp.stack(whh)                     # (ndir, H, 3H)
    params["bih"] = jnp.ones((ndir, 3 * hidden), jnp.float32)
    params["bhh"] = jnp.ones((ndir, 3 * hidden), jnp.float32)
    return params


def pack_params(params, hidden, hidden_pad):
    """Pack gate weights into lane-padded [r|z|n] blocks and pre-fold biases."""
    pad_h = hidden_pad - hidden

    def pack_cols(w):                                   # (..., 3H) -> (..., 3Hp)
        r, z, n = jnp.split(w, 3, axis=-1)
        pad = [(0, 0)] * (w.ndim - 1) + [(0, pad_h)]
        return jnp.concatenate([jnp.pad(r, pad), jnp.pad(z, pad), jnp.pad(n, pad)],
                               axis=-1)

    wih_p = pack_cols(params["wih"])                                   # (ndir,E,3Hp)
    whh_p = jnp.pad(pack_cols(params["whh"]),
                    ((0, 0), (0, pad_h), (0, 0)))                      # (ndir,Hp,3Hp)

    b_ir, b_iz, b_in = jnp.split(params["bih"], 3, axis=-1)
    b_hr, b_hz, b_hn = jnp.split(params["bhh"], 3, axis=-1)
    padb = ((0, 0), (0, pad_h))
    bias_i = jnp.concatenate([jnp.pad(b_ir + b_hr, padb),
                              jnp.pad(b_iz + b_hz, padb),
                              jnp.pad(b_in, padb)], axis=-1)[:, None, :]  # (ndir,1,3Hp)
    bhn = jnp.pad(b_hn, padb)[:, None, :]                                 # (ndir,1,Hp)

    return {"embedding": params["embedding"], "wih": wih_p, "whh": whh_p,
            "bias_i": bias_i, "bhn": bhn}


# ----------------------------------------------------------------------------
# Pure-JAX reference (correctness sanity check)
# ----------------------------------------------------------------------------
def _gru_ref(x_seq, wih, whh, bih, bhh, hidden):
    def step(h, x):
        gi = x @ wih + bih
        gh = h @ whh + bhh
        i_r, i_z, i_n = jnp.split(gi, 3, -1)
        h_r, h_z, h_n = jnp.split(gh, 3, -1)
        r = jax.nn.sigmoid(i_r + h_r)
        z = jax.nn.sigmoid(i_z + h_z)
        n = jnp.tanh(i_n + r * h_n)
        return (1.0 - z) * n + z * h, None

    h0 = jnp.zeros((x_seq.shape[1], hidden), jnp.float32)
    h_final, _ = jax.lax.scan(step, h0, x_seq)
    return h_final


def encoder_ref(sentences, params, bidirectional, hidden):
    emb = jnp.take(params["embedding"], sentences, axis=0)
    x = jnp.transpose(emb, (1, 0, 2))
    h_fwd = _gru_ref(x, params["wih"][0], params["whh"][0],
                     params["bih"][0], params["bhh"][0], hidden)
    if bidirectional:
        h_bwd = _gru_ref(x[::-1], params["wih"][1], params["whh"][1],
                         params["bih"][1], params["bhh"][1], hidden)
        thought = jnp.concatenate([h_fwd, h_bwd], axis=1)
    else:
        thought = h_fwd
    return emb, thought


if __name__ == "__main__":
    VOCAB, EMBED, THOUGHT = 64, 32, 32
    BATCH, SEQ = 2, 8
    BIDIRECTIONAL = True
    NDIR = 2 if BIDIRECTIONAL else 1
    HP = 128                       # thought_size padded to one full lane width

    key = jax.random.PRNGKey(0)
    k_param, k_data = jax.random.split(key)
    raw_params = init_params(k_param, VOCAB, EMBED, THOUGHT, NDIR)
    kparams = pack_params(raw_params, THOUGHT, HP)
    sentences = jax.random.randint(k_data, (BATCH, SEQ), 0, VOCAB, jnp.int32)

    fwd = jax.jit(functools.partial(encoder_forward, hidden=THOUGHT))
    word_embeddings, thought_vectors = fwd(sentences, kparams)
    jax.block_until_ready((word_embeddings, thought_vectors))

    emb_ref, thought_ref = encoder_ref(sentences, raw_params, BIDIRECTIONAL, THOUGHT)
    assert word_embeddings.shape == (BATCH, SEQ, EMBED)
    assert thought_vectors.shape == (BATCH, NDIR * THOUGHT)
    assert jnp.allclose(word_embeddings, emb_ref, atol=1e-5, rtol=1e-5)
    assert jnp.allclose(thought_vectors, thought_ref, atol=1e-4, rtol=1e-4)

    print("KERNEL_OK")
</pallas_src>

<mosaic_0001>
module attributes {stable_mosaic.version = 11 : i64} {
  func.func @_embed_proj_kernel(%arg0: memref<64x1xi32, #tpu.memory_space<vmem>>, %arg1: memref<64x32xf32, #tpu.memory_space<vmem>>, %arg2: memref<2x32x384xf32, #tpu.memory_space<vmem>>, %arg3: memref<2x1x384xf32, #tpu.memory_space<vmem>>, %arg4: memref<64x32xf32, #tpu.memory_space<vmem>>, %arg5: memref<2x64x384xf32, #tpu.memory_space<vmem>>) attributes {dimension_semantics = [], scalar_prefetch = 0 : i64, scratch_operands = 0 : i64, tpu.core_type = #tpu.core_type<tc>} {
    %c0 = arith.constant 0 : index
    %c0_0 = arith.constant 0 : index
    %0 = vector.load %arg0[%c0, %c0_0] : memref<64x1xi32, #tpu.memory_space<vmem>>, vector<64x1xi32>
    %1 = tpu.iota {dimensions = array<i32: 1>} : vector<64x64xi32>
    %2 = vector.broadcast %0 : vector<64x1xi32> to vector<64x64xi32>
    %3 = arith.cmpi eq, %2, %1 : vector<64x64xi32>
    %4 = arith.extui %3 : vector<64x64xi1> to vector<64x64xi32>
    %5 = arith.sitofp %4 : vector<64x64xi32> to vector<64x64xf32>
    %c0_1 = arith.constant 0 : index
    %c0_2 = arith.constant 0 : index
    %6 = vector.load %arg1[%c0_1, %c0_2] : memref<64x32xf32, #tpu.memory_space<vmem>>, vector<64x32xf32>
    %cst = arith.constant dense<0.000000e+00> : vector<64x32xf32>
    %7 = tpu.matmul %5, %6, %cst {dimension_numbers = #tpu.dot_dimension_numbers<[1], [0], [0], [1], [0, 0, 1, 1], [], []>} : vector<64x64xf32>, vector<64x32xf32>, vector<64x32xf32> -> vector<64x32xf32>
    %c0_3 = arith.constant 0 : index
    %c0_4 = arith.constant 0 : index
    %8 = vector.load %arg4[%c0_3, %c0_4] : memref<64x32xf32, #tpu.memory_space<vmem>>, vector<64x32xf32>
    tpu.vector_store %arg4[%c0_3, %c0_4], %7 {strides = array<i32>} : memref<64x32xf32, #tpu.memory_space<vmem>>, vector<64x32xf32>,
    %c0_5 = arith.constant 0 : index
    %c0_6 = arith.constant 0 : index
    %c0_7 = arith.constant 0 : index
    %9 = vector.load %arg2[%c0_5, %c0_6, %c0_7] : memref<2x32x384xf32, #tpu.memory_space<vmem>>, vector<1x32x384xf32>
    %10 = vector.shape_cast %9 : vector<1x32x384xf32> to vector<32x384xf32>
    %cst_8 = arith.constant dense<0.000000e+00> : vector<64x384xf32>
    %11 = tpu.matmul %7, %10, %cst_8 {dimension_numbers = #tpu.dot_dimension_numbers<[1], [0], [0], [1], [0, 0, 1, 1], [], []>} : vector<64x32xf32>, vector<32x384xf32>, vector<64x384xf32> -> vector<64x384xf32>
    %c0_9 = arith.constant 0 : index
    %c0_10 = arith.constant 0 : index
    %c0_11 = arith.constant 0 : index
    %12 = vector.load %arg3[%c0_9, %c0_10, %c0_11] : memref<2x1x384xf32, #tpu.memory_space<vmem>>, vector<1x1x384xf32>
    %13 = vector.shape_cast %12 : vector<1x1x384xf32> to vector<1x384xf32>
    %14 = vector.broadcast %13 : vector<1x384xf32> to vector<64x384xf32>
    %15 = arith.addf %11, %14 : vector<64x384xf32>
    %c0_12 = arith.constant 0 : index
    %c0_13 = arith.constant 0 : index
    %c0_14 = arith.constant 0 : index
    %16 = vector.load %arg5[%c0_12, %c0_13, %c0_14] : memref<2x64x384xf32, #tpu.memory_space<vmem>>, vector<1x64x384xf32>
    %17 = vector.shape_cast %16 : vector<1x64x384xf32> to vector<64x384xf32>
    %18 = vector.shape_cast %15 : vector<64x384xf32> to vector<1x64x384xf32>
    tpu.vector_store %arg5[%c0_12, %c0_13, %c0_14], %18 {strides = array<i32>} : memref<2x64x384xf32, #tpu.memory_space<vmem>>, vector<1x64x384xf32>,
    %c1 = arith.constant 1 : index
    %c0_15 = arith.constant 0 : index
    %c0_16 = arith.constant 0 : index
    %19 = vector.load %arg2[%c1, %c0_15, %c0_16] : memref<2x32x384xf32, #tpu.memory_space<vmem>>, vector<1x32x384xf32>
    %20 = vector.shape_cast %19 : vector<1x32x384xf32> to vector<32x384xf32>
    %cst_17 = arith.constant dense<0.000000e+00> : vector<64x384xf32>
    %21 = tpu.matmul %7, %20, %cst_17 {dimension_numbers = #tpu.dot_dimension_numbers<[1], [0], [0], [1], [0, 0, 1, 1], [], []>} : vector<64x32xf32>, vector<32x384xf32>, vector<64x384xf32> -> vector<64x384xf32>
    %c1_18 = arith.constant 1 : index
    %c0_19 = arith.constant 0 : index
    %c0_20 = arith.constant 0 : index
    %22 = vector.load %arg3[%c1_18, %c0_19, %c0_20] : memref<2x1x384xf32, #tpu.memory_space<vmem>>, vector<1x1x384xf32>
    %23 = vector.shape_cast %22 : vector<1x1x384xf32> to vector<1x384xf32>
    %24 = vector.broadcast %23 : vector<1x384xf32> to vector<64x384xf32>
    %25 = arith.addf %21, %24 : vector<64x384xf32>
    %c1_21 = arith.constant 1 : index
    %c0_22 = arith.constant 0 : index
    %c0_23 = arith.constant 0 : index
    %26 = vector.load %arg5[%c1_21, %c0_22, %c0_23] : memref<2x64x384xf32, #tpu.memory_space<vmem>>, vector<1x64x384xf32>
    %27 = vector.shape_cast %26 : vector<1x64x384xf32> to vector<64x384xf32>
    %28 = vector.shape_cast %25 : vector<64x384xf32> to vector<1x64x384xf32>
    tpu.vector_store %arg5[%c1_21, %c0_22, %c0_23], %28 {strides = array<i32>} : memref<2x64x384xf32, #tpu.memory_space<vmem>>, vector<1x64x384xf32>,
    return
  }
}

module attributes {stable_mosaic.version = 11 : i64} {
  func.func @_gru_kernel(%arg0: i32, %arg1: memref<1x8x8x384xf32, #tpu.memory_space<vmem>>, %arg2: memref<1x128x384xf32, #tpu.memory_space<vmem>>, %arg3: memref<1x1x128xf32, #tpu.memory_space<vmem>>, %arg4: memref<1x8x128xf32, #tpu.memory_space<vmem>>) attributes {dimension_semantics = [#tpu.dimension_semantics<parallel>], iteration_bounds = array<i64: 2>, scalar_prefetch = 0 : i64, scratch_operands = 0 : i64, tpu.core_type = #tpu.core_type<tc>, window_params = [{transform_indices = @transform_0, window_bounds = array<i64: 1, 8, 8, 384>}, {transform_indices = @transform_1, window_bounds = array<i64: 1, 128, 384>}, {transform_indices = @transform_2, window_bounds = array<i64: 1, 1, 128>}, {transform_indices = @transform_3, window_bounds = array<i64: 1, 8, 128>}]} {
    %c0 = arith.constant 0 : index
    %c0_0 = arith.constant 0 : index
    %c0_1 = arith.constant 0 : index
    %0 = vector.load %arg2[%c0, %c0_0, %c0_1] : memref<1x128x384xf32, #tpu.memory_space<vmem>>, vector<1x128x384xf32>
    %1 = vector.shape_cast %0 : vector<1x128x384xf32> to vector<128x384xf32>
    %c0_2 = arith.constant 0 : index
    %c0_3 = arith.constant 0 : index
    %c0_4 = arith.constant 0 : index
    %2 = vector.load %arg3[%c0_2, %c0_3, %c0_4] : memref<1x1x128xf32, #tpu.memory_space<vmem>>, vector<1x1x128xf32>
    %3 = vector.shape_cast %2 : vector<1x1x128xf32> to vector<1x128xf32>
    %cst = arith.constant 0.000000e+00 : f32
    %4 = vector.broadcast %cst : f32 to vector<8x128xf32>
    %c0_i32 = arith.constant 0 : i32
    %c0_i32_5 = arith.constant 0 : i32
    %5 = arith.cmpi eq, %arg0, %c0_i32_5 : i32
    %c7_i32 = arith.constant 7 : i32
    %6 = arith.subi %c7_i32, %c0_i32 : i32
    %7 = arith.select %5, %c0_i32, %6 : i32
    %c0_6 = arith.constant 0 : index
    %8 = arith.index_cast %7 : i32 to index
    %c0_7 = arith.constant 0 : index
    %c0_8 = arith.constant 0 : index
    %9 = vector.load %arg1[%c0_6, %8, %c0_7, %c0_8] : memref<1x8x8x384xf32, #tpu.memory_space<vmem>>, vector<1x1x8x384xf32>
    %10 = vector.shape_cast %9 : vector<1x1x8x384xf32> to vector<8x384xf32>
    %cst_9 = arith.constant dense<0.000000e+00> : vector<8x384xf32>
    %11 = tpu.matmul %4, %1, %cst_9 {dimension_numbers = #tpu.dot_dimension_numbers<[1], [0], [0], [1], [0, 0, 1, 1], [], []>} : vector<8x128xf32>, vector<128x384xf32>, vector<8x384xf32> -> vector<8x384xf32>
    %12 = vector.extract_strided_slice %10 {offsets = [0, 0], sizes = [8, 256], strides = [1, 1]} : vector<8x384xf32> to vector<8x256xf32>
    %13 = vector.extract_strided_slice %11 {offsets = [0, 0], sizes = [8, 256], strides = [1, 1]} : vector<8x384xf32> to vector<8x256xf32>
    %14 = arith.addf %12, %13 : vector<8x256xf32>
    %15 = arith.negf %14 : vector<8x256xf32>
    %16 = math.exp %15 : vector<8x256xf32>
    %cst_10 = arith.constant 1.000000e+00 : f32
    %17 = vector.broadcast %cst_10 : f32 to vector<8x256xf32>
    %18 = arith.addf %17, %16 : vector<8x256xf32>
    %19 = arith.divf %17, %18 : vector<8x256xf32>
    %20 = vector.extract_strided_slice %19 {offsets = [0, 0], sizes = [8, 128], strides = [1, 1]} : vector<8x256xf32> to vector<8x128xf32>
    %21 = vector.extract_strided_slice %19 {offsets = [0, 128], sizes = [8, 128], strides = [1, 1]} : vector<8x256xf32> to vector<8x128xf32>
    %22 = vector.extract_strided_slice %10 {offsets = [0, 256], sizes = [8, 128], strides = [1, 1]} : vector<8x384xf32> to vector<8x128xf32>
    %23 = vector.extract_strided_slice %11 {offsets = [0, 256], sizes = [8, 128], strides = [1, 1]} : vector<8x384xf32> to vector<8x128xf32>
    %24 = vector.broadcast %3 : vector<1x128xf32> to vector<8x128xf32>
    %25 = arith.addf %23, %24 : vector<8x128xf32>
    %26 = arith.mulf %20, %25 : vector<8x128xf32>
    %27 = arith.addf %22, %26 : vector<8x128xf32>
    %28 = math.tanh %27 : vector<8x128xf32>
    %cst_11 = arith.constant 1.000000e+00 : f32
    %29 = vector.broadcast %cst_11 : f32 to vector<8x128xf32>
    %30 = arith.subf %29, %21 : vector<8x128xf32>
    %31 = arith.mulf %30, %28 : vector<8x128xf32>
    %32 = arith.mulf %21, %4 : vector<8x128xf32>
    %33 = arith.addf %31, %32 : vector<8x128xf32>
    %c1_i32 = arith.constant 1 : i32
    %c0_i32_12 = arith.constant 0 : i32
    %34 = arith.cmpi eq, %arg0, %c0_i32_12 : i32
    %c7_i32_13 = arith.constant 7 : i32
    %35 = arith.subi %c7_i32_13, %c1_i32 : i32
    %36 = arith.select %34, %c1_i32, %35 : i32
    %c0_14 = arith.constant 0 : index
    %37 = arith.index_cast %36 : i32 to index
    %c0_15 = arith.constant 0 : index
    %c0_16 = arith.constant 0 : index
    %38 = vector.load %arg1[%c0_14, %37, %c0_15, %c0_16] : memref<1x8x8x384xf32, #tpu.memory_space<vmem>>, vector<1x1x8x384xf32>
    %39 = vector.shape_cast %38 : vector<1x1x8x384xf32> to vector<8x384xf32>
    %cst_17 = arith.constant dense<0.000000e+00> : vector<8x384xf32>
    %40 = tpu.matmul %33, %1, %cst_17 {dimension_numbers = #tpu.dot_dimension_numbers<[1], [0], [0], [1], [0, 0, 1, 1], [], []>} : vector<8x128xf32>, vector<128x384xf32>, vector<8x384xf32> -> vector<8x384xf32>
    %41 = vector.extract_strided_slice %39 {offsets = [0, 0], sizes = [8, 256], strides = [1, 1]} : vector<8x384xf32> to vector<8x256xf32>
    %42 = vector.extract_strided_slice %40 {offsets = [0, 0], sizes = [8, 256], strides = [1, 1]} : vector<8x384xf32> to vector<8x256xf32>
    %43 = arith.addf %41, %42 : vector<8x256xf32>
    %44 = arith.negf %43 : vector<8x256xf32>
    %45 = math.exp %44 : vector<8x256xf32>
    %cst_18 = arith.constant 1.000000e+00 : f32
    %46 = vector.broadcast %cst_18 : f32 to vector<8x256xf32>
    %47 = arith.addf %46, %45 : vector<8x256xf32>
    %48 = arith.divf %46, %47 : vector<8x256xf32>
    %49 = vector.extract_strided_slice %48 {offsets = [0, 0], sizes = [8, 128], strides = [1, 1]} : vector<8x256xf32> to vector<8x128xf32>
    %50 = vector.extract_strided_slice %48 {offsets = [0, 128], sizes = [8, 128], strides = [1, 1]} : vector<8x256xf32> to vector<8x128xf32>
    %51 = vector.extract_strided_slice %39 {offsets = [0, 256], sizes = [8, 128], strides = [1, 1]} : vector<8x384xf32> to vector<8x128xf32>
    %52 = vector.extract_strided_slice %40 {offsets = [0, 256], sizes = [8, 128], strides = [1, 1]} : vector<8x384xf32> to vector<8x128xf32>
    %53 = vector.broadcast %3 : vector<1x128xf32> to vector<8x128xf32>
    %54 = arith.addf %52, %53 : vector<8x128xf32>
    %55 = arith.mulf %49, %54 : vector<8x128xf32>
    %56 = arith.addf %51, %55 : vector<8x128xf32>
    %57 = math.tanh %56 : vector<8x128xf32>
    %cst_19 = arith.constant 1.000000e+00 : f32
    %58 = vector.broadcast %cst_19 : f32 to vector<8x128xf32>
    %59 = arith.subf %58, %50 : vector<8x128xf32>
    %60 = arith.mulf %59, %57 : vector<8x128xf32>
    %61 = arith.mulf %50, %33 : vector<8x128xf32>
    %62 = arith.addf %60, %61 : vector<8x128xf32>
    %c2_i32 = arith.constant 2 : i32
    %c0_i32_20 = arith.constant 0 : i32
    %63 = arith.cmpi eq, %arg0, %c0_i32_20 : i32
    %c7_i32_21 = arith.constant 7 : i32
    %64 = arith.subi %c7_i32_21, %c2_i32 : i32
    %65 = arith.select %63, %c2_i32, %64 : i32
    %c0_22 = arith.constant 0 : index
    %66 = arith.index_cast %65 : i32 to index
    %c0_23 = arith.constant 0 : index
    %c0_24 = arith.constant 0 : index
    %67 = vector.load %arg1[%c0_22, %66, %c0_23, %c0_24] : memref<1x8x8x384xf32, #tpu.memory_space<vmem>>, vector<1x1x8x384xf32>
    %68 = vector.shape_cast %67 : vector<1x1x8x384xf32> to vector<8x384xf32>
    %cst_25 = arith.constant dense<0.000000e+00> : vector<8x384xf32>
    %69 = tpu.matmul %62, %1, %cst_25 {dimension_numbers = #tpu.dot_dimension_numbers<[1], [0], [0], [1], [0, 0, 1, 1], [], []>} : vector<8x128xf32>, vector<128x384xf32>, vector<8x384xf32> -> vector<8x384xf32>
    %70 = vector.extract_strided_slice %68 {offsets = [0, 0], sizes = [8, 256], strides = [1, 1]} : vector<8x384xf32> to vector<8x256xf32>
    %71 = vector.extract_strided_slice %69 {offsets = [0, 0], sizes = [8, 256], strides = [1, 1]} : vector<8x384xf32> to vector<8x256xf32>
    %72 = arith.addf %70, %71 : vector<8x256xf32>
    %73 = arith.negf %72 : vector<8x256xf32>
    %74 = math.exp %73 : vector<8x256xf32>
    %cst_26 = arith.constant 1.000000e+00 : f32
    %75 = vector.broadcast %cst_26 : f32 to vector<8x256xf32>
    %76 = arith.addf %75, %74 : vector<8x256xf32>
    %77 = arith.divf %75, %76 : vector<8x256xf32>
    %78 = vector.extract_strided_slice %77 {offsets = [0, 0], sizes = [8, 128], strides = [1, 1]} : vector<8x256xf32> to vector<8x128xf32>
    %79 = vector.extract_strided_slice %77 {offsets = [0, 128], sizes = [8, 128], strides = [1, 1]} : vector<8x256xf32> to vector<8x128xf32>
    %80 = vector.extract_strided_slice %68 {offsets = [0, 256], sizes = [8, 128], strides = [1, 1]} : vector<8x384xf32> to vector<8x128xf32>
    %81 = vector.extract_strided_slice %69 {offsets = [0, 256], sizes = [8, 128], strides = [1, 1]} : vector<8x384xf32> to vector<8x128xf32>
    %82 = vector.broadcast %3 : vector<1x128xf32> to vector<8x128xf32>
    %83 = arith.addf %81, %82 : vector<8x128xf32>
    %84 = arith.mulf %78, %83 : vector<8x128xf32>
    %85 = arith.addf %80, %84 : vector<8x128xf32>
    %86 = math.tanh %85 : vector<8x128xf32>
    %cst_27 = arith.constant 1.000000e+00 : f32
    %87 = vector.broadcast %cst_27 : f32 to vector<8x128xf32>
    %88 = arith.subf %87, %79 : vector<8x128xf32>
    %89 = arith.mulf %88, %86 : vector<8x128xf32>
    %90 = arith.mulf %79, %62 : vector<8x128xf32>
    %91 = arith.addf %89, %90 : vector<8x128xf32>
    %c3_i32 = arith.constant 3 : i32
    %c0_i32_28 = arith.constant 0 : i32
    %92 = arith.cmpi eq, %arg0, %c0_i32_28 : i32
    %c7_i32_29 = arith.constant 7 : i32
    %93 = arith.subi %c7_i32_29, %c3_i32 : i32
    %94 = arith.select %92, %c3_i32, %93 : i32
    %c0_30 = arith.constant 0 : index
    %95 = arith.index_cast %94 : i32 to index
    %c0_31 = arith.constant 0 : index
    %c0_32 = arith.constant 0 : index
    %96 = vector.load %arg1[%c0_30, %95, %c0_31, %c0_32] : memref<1x8x8x384xf32, #tpu.memory_space<vmem>>, vector<1x1x8x384xf32>
    %97 = vector.shape_cast %96 : vector<1x1x8x384xf32> to vector<8x384xf32>
    %cst_33 = arith.constant dense<0.000000e+00> : vector<8x384xf32>
    %98 = tpu.matmul %91, %1, %cst_33 {dimension_numbers = #tpu.dot_dimension_numbers<[1], [0], [0], [1], [0, 0, 1, 1], [], []>} : vector<8x128xf32>, vector<128x384xf32>, vector<8x384xf32> -> vector<8x384xf32>
    %99 = vector.extract_strided_slice %97 {offsets = [0, 0], sizes = [8, 256], strides = [1, 1]} : vector<8x384xf32> to vector<8x256xf32>
    %100 = vector.extract_strided_slice %98 {offsets = [0, 0], sizes = [8, 256], strides = [1, 1]} : vector<8x384xf32> to vector<8x256xf32>
    %101 = arith.addf %99, %100 : vector<8x256xf32>
    %102 = arith.negf %101 : vector<8x256xf32>
    %103 = math.exp %102 : vector<8x256xf32>
    %cst_34 = arith.constant 1.000000e+00 : f32
    %104 = vector.broadcast %cst_34 : f32 to vector<8x256xf32>
    %105 = arith.addf %104, %103 : vector<8x256xf32>
    %106 = arith.divf %104, %105 : vector<8x256xf32>
    %107 = vector.extract_strided_slice %106 {offsets = [0, 0], sizes = [8, 128], strides = [1, 1]} : vector<8x256xf32> to vector<8x128xf32>
    %108 = vector.extract_strided_slice %106 {offsets = [0, 128], sizes = [8, 128], strides = [1, 1]} : vector<8x256xf32> to vector<8x128xf32>
    %109 = vector.extract_strided_slice %97 {offsets = [0, 256], sizes = [8, 128], strides = [1, 1]} : vector<8x384xf32> to vector<8x128xf32>
    %110 = vector.extract_strided_slice %98 {offsets = [0, 256], sizes = [8, 128], strides = [1, 1]} : vector<8x384xf32> to vector<8x128xf32>
    %111 = vector.broadcast %3 : vector<1x128xf32> to vector<8x128xf32>
    %112 = arith.addf %110, %111 : vector<8x128xf32>
    %113 = arith.mulf %107, %112 : vector<8x128xf32>
    %114 = arith.addf %109, %113 : vector<8x128xf32>
    %115 = math.tanh %114 : vector<8x128xf32>
    %cst_35 = arith.constant 1.000000e+00 : f32
    %116 = vector.broadcast %cst_35 : f32 to vector<8x128xf32>
    %117 = arith.subf %116, %108 : vector<8x128xf32>
    %118 = arith.mulf %117, %115 : vector<8x128xf32>
    %119 = arith.mulf %108, %91 : vector<8x128xf32>
    %120 = arith.addf %118, %119 : vector<8x128xf32>
    %c4_i32 = arith.constant 4 : i32
    %c0_i32_36 = arith.constant 0 : i32
    %121 = arith.cmpi eq, %arg0, %c0_i32_36 : i32
    %c7_i32_37 = arith.constant 7 : i32
    %122 = arith.subi %c7_i32_37, %c4_i32 : i32
    %123 = arith.select %121, %c4_i32, %122 : i32
    %c0_38 = arith.constant 0 : index
    %124 = arith.index_cast %123 : i32 to index
    %c0_39 = arith.constant 0 : index
    %c0_40 = arith.constant 0 : index
    %125 = vector.load %arg1[%c0_38, %124, %c0_39, %c0_40] : memref<1x8x8x384xf32, #tpu.memory_space<vmem>>, vector<1x1x8x384xf32>
    %126 = vector.shape_cast %125 : vector<1x1x8x384xf32> to vector<8x384xf32>
    %cst_41 = arith.constant dense<0.000000e+00> : vector<8x384xf32>
    %127 = tpu.matmul %120, %1, %cst_41 {dimension_numbers = #tpu.dot_dimension_numbers<[1], [0], [0], [1], [0, 0, 1, 1], [], []>} : vector<8x128xf32>, vector<128x384xf32>, vector<8x384xf32> -> vector<8x384xf32>
    %128 = vector.extract_strided_slice %126 {offsets = [0, 0], sizes = [8, 256], strides = [1, 1]} : vector<8x384xf32> to vector<8x256xf32>
    %129 = vector.extract_strided_slice %127 {offsets = [0, 0], sizes = [8, 256], strides = [1, 1]} : vector<8x384xf32> to vector<8x256xf32>
    %130 = arith.addf %128, %129 : vector<8x256xf32>
    %131 = arith.negf %130 : vector<8x256xf32>
    %132 = math.exp %131 : vector<8x256xf32>
    %cst_42 = arith.constant 1.000000e+00 : f32
    %133 = vector.broadcast %cst_42 : f32 to vector<8x256xf32>
    %134 = arith.addf %133, %132 : vector<8x256xf32>
    %135 = arith.divf %133, %134 : vector<8x256xf32>
    %136 = vector.extract_strided_slice %135 {offsets = [0, 0], sizes = [8, 128], strides = [1, 1]} : vector<8x256xf32> to vector<8x128xf32>
    %137 = vector.extract_strided_slice %135 {offsets = [0, 128], sizes = [8, 128], strides = [1, 1]} : vector<8x256xf32> to vector<8x128xf32>
    %138 = vector.extract_strided_slice %126 {offsets = [0, 256], sizes = [8, 128], strides = [1, 1]} : vector<8x384xf32> to vector<8x128xf32>
    %139 = vector.extract_strided_slice %127 {offsets = [0, 256], sizes = [8, 128], strides = [1, 1]} : vector<8x384xf32> to vector<8x128xf32>
    %140 = vector.broadcast %3 : vector<1x128xf32> to vector<8x128xf32>
    %141 = arith.addf %139, %140 : vector<8x128xf32>
    %142 = arith.mulf %136, %141 : vector<8x128xf32>
    %143 = arith.addf %138, %142 : vector<8x128xf32>
    %144 = math.tanh %143 : vector<8x128xf32>
    %cst_43 = arith.constant 1.000000e+00 : f32
    %145 = vector.broadcast %cst_43 : f32 to vector<8x128xf32>
    %146 = arith.subf %145, %137 : vector<8x128xf32>
    %147 = arith.mulf %146, %144 : vector<8x128xf32>
    %148 = arith.mulf %137, %120 : vector<8x128xf32>
    %149 = arith.addf %147, %148 : vector<8x128xf32>
    %c5_i32 = arith.constant 5 : i32
    %c0_i32_44 = arith.constant 0 : i32
    %150 = arith.cmpi eq, %arg0, %c0_i32_44 : i32
    %c7_i32_45 = arith.constant 7 : i32
    %151 = arith.subi %c7_i32_45, %c5_i32 : i32
    %152 = arith.select %150, %c5_i32, %151 : i32
    %c0_46 = arith.constant 0 : index
    %153 = arith.index_cast %152 : i32 to index
    %c0_47 = arith.constant 0 : index
    %c0_48 = arith.constant 0 : index
    %154 = vector.load %arg1[%c0_46, %153, %c0_47, %c0_48] : memref<1x8x8x384xf32, #tpu.memory_space<vmem>>, vector<1x1x8x384xf32>
    %155 = vector.shape_cast %154 : vector<1x1x8x384xf32> to vector<8x384xf32>
    %cst_49 = arith.constant dense<0.000000e+00> : vector<8x384xf32>
    %156 = tpu.matmul %149, %1, %cst_49 {dimension_numbers = #tpu.dot_dimension_numbers<[1], [0], [0], [1], [0, 0, 1, 1], [], []>} : vector<8x128xf32>, vector<128x384xf32>, vector<8x384xf32> -> vector<8x384xf32>
    %157 = vector.extract_strided_slice %155 {offsets = [0, 0], sizes = [8, 256], strides = [1, 1]} : vector<8x384xf32> to vector<8x256xf32>
    %158 = vector.extract_strided_slice %156 {offsets = [0, 0], sizes = [8, 256], strides = [1, 1]} : vector<8x384xf32> to vector<8x256xf32>
    %159 = arith.addf %157, %158 : vector<8x256xf32>
    %160 = arith.negf %159 : vector<8x256xf32>
    %161 = math.exp %160 : vector<8x256xf32>
    %cst_50 = arith.constant 1.000000e+00 : f32
    %162 = vector.broadcast %cst_50 : f32 to vector<8x256xf32>
    %163 = arith.addf %162, %161 : vector<8x256xf32>
    %164 = arith.divf %162, %163 : vector<8x256xf32>
    %165 = vector.extract_strided_slice %164 {offsets = [0, 0], sizes = [8, 128], strides = [1, 1]} : vector<8x256xf32> to vector<8x128xf32>
    %166 = vector.extract_strided_slice %164 {offsets = [0, 128], sizes = [8, 128], strides = [1, 1]} : vector<8x256xf32> to vector<8x128xf32>
    %167 = vector.extract_strided_slice %155 {offsets = [0, 256], sizes = [8, 128], strides = [1, 1]} : vector<8x384xf32> to vector<8x128xf32>
    %168 = vector.extract_strided_slice %156 {offsets = [0, 256], sizes = [8, 128], strides = [1, 1]} : vector<8x384xf32> to vector<8x128xf32>
    %169 = vector.broadcast %3 : vector<1x128xf32> to vector<8x128xf32>
    %170 = arith.addf %168, %169 : vector<8x128xf32>
    %171 = arith.mulf %165, %170 : vector<8x128xf32>
    %172 = arith.addf %167, %171 : vector<8x128xf32>
    %173 = math.tanh %172 : vector<8x128xf32>
    %cst_51 = arith.constant 1.000000e+00 : f32
    %174 = vector.broadcast %cst_51 : f32 to vector<8x128xf32>
    %175 = arith.subf %174, %166 : vector<8x128xf32>
    %176 = arith.mulf %175, %173 : vector<8x128xf32>
    %177 = arith.mulf %166, %149 : vector<8x128xf32>
    %178 = arith.addf %176, %177 : vector<8x128xf32>
    %c6_i32 = arith.constant 6 : i32
    %c0_i32_52 = arith.constant 0 : i32
    %179 = arith.cmpi eq, %arg0, %c0_i32_52 : i32
    %c7_i32_53 = arith.constant 7 : i32
    %180 = arith.subi %c7_i32_53, %c6_i32 : i32
    %181 = arith.select %179, %c6_i32, %180 : i32
    %c0_54 = arith.constant 0 : index
    %182 = arith.index_cast %181 : i32 to index
    %c0_55 = arith.constant 0 : index
    %c0_56 = arith.constant 0 : index
    %183 = vector.load %arg1[%c0_54, %182, %c0_55, %c0_56] : memref<1x8x8x384xf32, #tpu.memory_space<vmem>>, vector<1x1x8x384xf32>
    %184 = vector.shape_cast %183 : vector<1x1x8x384xf32> to vector<8x384xf32>
    %cst_57 = arith.constant dense<0.000000e+00> : vector<8x384xf32>
    %185 = tpu.matmul %178, %1, %cst_57 {dimension_numbers = #tpu.dot_dimension_numbers<[1], [0], [0], [1], [0, 0, 1, 1], [], []>} : vector<8x128xf32>, vector<128x384xf32>, vector<8x384xf32> -> vector<8x384xf32>
    %186 = vector.extract_strided_slice %184 {offsets = [0, 0], sizes = [8, 256], strides = [1, 1]} : vector<8x384xf32> to vector<8x256xf32>
    %187 = vector.extract_strided_slice %185 {offsets = [0, 0], sizes = [8, 256], strides = [1, 1]} : vector<8x384xf32> to vector<8x256xf32>
    %188 = arith.addf %186, %187 : vector<8x256xf32>
    %189 = arith.negf %188 : vector<8x256xf32>
    %190 = math.exp %189 : vector<8x256xf32>
    %cst_58 = arith.constant 1.000000e+00 : f32
    %191 = vector.broadcast %cst_58 : f32 to vector<8x256xf32>
    %192 = arith.addf %191, %190 : vector<8x256xf32>
    %193 = arith.divf %191, %192 : vector<8x256xf32>
    %194 = vector.extract_strided_slice %193 {offsets = [0, 0], sizes = [8, 128], strides = [1, 1]} : vector<8x256xf32> to vector<8x128xf32>
    %195 = vector.extract_strided_slice %193 {offsets = [0, 128], sizes = [8, 128], strides = [1, 1]} : vector<8x256xf32> to vector<8x128xf32>
    %196 = vector.extract_strided_slice %184 {offsets = [0, 256], sizes = [8, 128], strides = [1, 1]} : vector<8x384xf32> to vector<8x128xf32>
    %197 = vector.extract_strided_slice %185 {offsets = [0, 256], sizes = [8, 128], strides = [1, 1]} : vector<8x384xf32> to vector<8x128xf32>
    %198 = vector.broadcast %3 : vector<1x128xf32> to vector<8x128xf32>
    %199 = arith.addf %197, %198 : vector<8x128xf32>
    %200 = arith.mulf %194, %199 : vector<8x128xf32>
    %201 = arith.addf %196, %200 : vector<8x128xf32>
    %202 = math.tanh %201 : vector<8x128xf32>
    %cst_59 = arith.constant 1.000000e+00 : f32
    %203 = vector.broadcast %cst_59 : f32 to vector<8x128xf32>
    %204 = arith.subf %203, %195 : vector<8x128xf32>
    %205 = arith.mulf %204, %202 : vector<8x128xf32>
    %206 = arith.mulf %195, %178 : vector<8x128xf32>
    %207 = arith.addf %205, %206 : vector<8x128xf32>
    %c7_i32_60 = arith.constant 7 : i32
    %c0_i32_61 = arith.constant 0 : i32
    %208 = arith.cmpi eq, %arg0, %c0_i32_61 : i32
    %c7_i32_62 = arith.constant 7 : i32
    %209 = arith.subi %c7_i32_62, %c7_i32_60 : i32
    %210 = arith.select %208, %c7_i32_60, %209 : i32
    %c0_63 = arith.constant 0 : index
    %211 = arith.index_cast %210 : i32 to index
    %c0_64 = arith.constant 0 : index
    %c0_65 = arith.constant 0 : index
    %212 = vector.load %arg1[%c0_63, %211, %c0_64, %c0_65] : memref<1x8x8x384xf32, #tpu.memory_space<vmem>>, vector<1x1x8x384xf32>
    %213 = vector.shape_cast %212 : vector<1x1x8x384xf32> to vector<8x384xf32>
    %cst_66 = arith.constant dense<0.000000e+00> : vector<8x384xf32>
    %214 = tpu.matmul %207, %1, %cst_66 {dimension_numbers = #tpu.dot_dimension_numbers<[1], [0], [0], [1], [0, 0, 1, 1], [], []>} : vector<8x128xf32>, vector<128x384xf32>, vector<8x384xf32> -> vector<8x384xf32>
    %215 = vector.extract_strided_slice %213 {offsets = [0, 0], sizes = [8, 256], strides = [1, 1]} : vector<8x384xf32> to vector<8x256xf32>
    %216 = vector.extract_strided_slice %214 {offsets = [0, 0], sizes = [8, 256], strides = [1, 1]} : vector<8x384xf32> to vector<8x256xf32>
    %217 = arith.addf %215, %216 : vector<8x256xf32>
    %218 = arith.negf %217 : vector<8x256xf32>
    %219 = math.exp %218 : vector<8x256xf32>
    %cst_67 = arith.constant 1.000000e+00 : f32
    %220 = vector.broadcast %cst_67 : f32 to vector<8x256xf32>
    %221 = arith.addf %220, %219 : vector<8x256xf32>
    %222 = arith.divf %220, %221 : vector<8x256xf32>
    %223 = vector.extract_strided_slice %222 {offsets = [0, 0], sizes = [8, 128], strides = [1, 1]} : vector<8x256xf32> to vector<8x128xf32>
    %224 = vector.extract_strided_slice %222 {offsets = [0, 128], sizes = [8, 128], strides = [1, 1]} : vector<8x256xf32> to vector<8x128xf32>
    %225 = vector.extract_strided_slice %213 {offsets = [0, 256], sizes = [8, 128], strides = [1, 1]} : vector<8x384xf32> to vector<8x128xf32>
    %226 = vector.extract_strided_slice %214 {offsets = [0, 256], sizes = [8, 128], strides = [1, 1]} : vector<8x384xf32> to vector<8x128xf32>
    %227 = vector.broadcast %3 : vector<1x128xf32> to vector<8x128xf32>
    %228 = arith.addf %226, %227 : vector<8x128xf32>
    %229 = arith.mulf %223, %228 : vector<8x128xf32>
    %230 = arith.addf %225, %229 : vector<8x128xf32>
    %231 = math.tanh %230 : vector<8x128xf32>
    %cst_68 = arith.constant 1.000000e+00 : f32
    %232 = vector.broadcast %cst_68 : f32 to vector<8x128xf32>
    %233 = arith.subf %232, %224 : vector<8x128xf32>
    %234 = arith.mulf %233, %231 : vector<8x128xf32>
    %235 = arith.mulf %224, %207 : vector<8x128xf32>
    %236 = arith.addf %234, %235 : vector<8x128xf32>
    %c8_i32 = arith.constant 8 : i32
    %c0_69 = arith.constant 0 : index
    %c0_70 = arith.constant 0 : index
    %c0_71 = arith.constant 0 : index
    %237 = vector.load %arg4[%c0_69, %c0_70, %c0_71] : memref<1x8x128xf32, #tpu.memory_space<vmem>>, vector<1x8x128xf32>
    %238 = vector.shape_cast %237 : vector<1x8x128xf32> to vector<8x128xf32>
    %239 = vector.shape_cast %236 : vector<8x128xf32> to vector<1x8x128xf32>
    tpu.vector_store %arg4[%c0_69, %c0_70, %c0_71], %239 {strides = array<i32>} : memref<1x8x128xf32, #tpu.memory_space<vmem>>, vector<1x8x128xf32>,
    return
  }
  func.func @transform_0(%arg0: i32) -> (i32, i32, i32, i32) {
    %c0_i32 = arith.constant 0 : i32
    %c0_i32_0 = arith.constant 0 : i32
    %c0_i32_1 = arith.constant 0 : i32
    %c0_i32_2 = arith.constant 0 : i32
    return %arg0, %c0_i32, %c0_i32_0, %c0_i32_1 : i32, i32, i32, i32
  }
  func.func @transform_1(%arg0: i32) -> (i32, i32, i32) {
    %c0_i32 = arith.constant 0 : i32
    %c0_i32_0 = arith.constant 0 : i32
    %c0_i32_1 = arith.constant 0 : i32
    return %arg0, %c0_i32, %c0_i32_0 : i32, i32, i32
  }
  func.func @transform_2(%arg0: i32) -> (i32, i32, i32) {
    %c0_i32 = arith.constant 0 : i32
    %c0_i32_0 = arith.constant 0 : i32
    %c0_i32_1 = arith.constant 0 : i32
    return %arg0, %c0_i32, %c0_i32_0 : i32, i32, i32
  }
  func.func @transform_3(%arg0: i32) -> (i32, i32, i32) {
    %c0_i32 = arith.constant 0 : i32
    %c0_i32_0 = arith.constant 0 : i32
    %c0_i32_1 = arith.constant 0 : i32
    return %arg0, %c0_i32, %c0_i32_0 : i32, i32, i32
  }
}

</mosaic_0001>

<bundles_post_ra>
// kernel: encoder_forward.2
= control target key start
LH: loop header
LB: loop body
LE: loop exit
PB: predicated region body
PF: predicated region fallthrough
CT: control target
= control target key end

     0   :  { %11 = vsyncpa [#allocation3], 0  ;;  %s681_s21 = smov [#allocation2]   ;;  %s682_s23 = smov 384   ;;  %s1065_s0 = inlined_call_operand.vmem [shape: s32[64,1], index: 0, kind: input, shape index: {}]   ;;  %s1066_s1 = inlined_call_operand.vmem [shape: f32[64,32], index: 1, kind: input, shape index: {}]   ;;  %s1067_s2 = inlined_call_operand.hbm [shape: f32[2,32,384], index: 2, kind: input, shape index: {}]   ;;  %s1068_s3 = inlined_call_operand.vmem [shape: f32[2,1,384], index: 3, kind: input, shape index: {}]   ;;  %s1069_s4 = inlined_call_operand.vmem [shape: f32[64,32], index: 4, kind: output, shape index: {0}]   ;;  %s1070_s5 = inlined_call_operand.vmem [shape: f32[2,64,384], index: 5, kind: output, shape index: {1}]  }
   0x1   :  { %s20_s20 = sshll.u32 %s1067_s2, 4  ;;  %s22_s22 = sshll.u32 %s681_s21, 4  ;;  %s21_s20 = int_to_ptr.hbm [resolvable:$true] %s20_s20  ;;  %s23_s22 = int_to_ptr.vmem [resolvable:$true] %s22_s22 }
   0x2   :  { %s683_s24 = smov 24  }
   0x3   :  { %28 = dma.hbm_to_vmem [thread:$0]  %s21_s20, 3072, %s23_s22, [#allocation3], %s682_s23, %s682_s23, %s683_s24  }
   0x4   :  { %679 = dma.done.wait [#allocation3], 3072  }
   0x5   :  { %680 = vsyncadd [#allocation3], 4294964224  ;;  %v684_v0 = vmov 0   ;;  %v37_v1 = vld [vmem:[%s1065_s0 + $0x10] sm:$0xff]  ;;  %v35_v2 = vld [vmem:[%s1065_s0] sm:$0xff]  ;;  %v43_v17 = vlaneseq  ;;  %vm101_vm0 = vcmask 523264  }
   0x6   :  { %653 = vset.pattern.permute.xlu1 %v684_v0  ;;  %652 = vset.pattern.permute.xlu0 %v684_v0  ;;  %v39_v3 = vld [vmem:[%s1065_s0 + $0x20] sm:$0xff]  ;;  %v100_v4 = vld [vmem:[%s1066_s1 + $0x38] sm:$0xff]  ;;  %v99_v5 = vld [vmem:[%s1066_s1 + $0x30] sm:$0xff]  ;;  %v685_v20 = vmov 0.0   ;;  %vm167_vm9 = vcmask 261120  }
   0x7   :  { %654 = vset.pattern.permute.xlu2 %v684_v0  ;;  %52 = vperm.xlu1 %653, %v37_v1   ;;  %v98_v6 = vld [vmem:[%s1066_s1 + $0x28] sm:$0xff]  ;;  %v38_v7 = vld [vmem:[%s1065_s0 + $0x18] sm:$0xff]  ;;  %v97_v9 = vld [vmem:[%s1066_s1 + $0x20] sm:$0xff]  ;;  %v44_v18 = vand.u32 127, %v43_v17 }
   0x8   :  { %46 = vperm.xlu0 %652, %v35_v2   ;;  %58 = vperm.xlu2 %654, %v39_v3   ;;  %v36_v8 = vld [vmem:[%s1065_s0 + $0x8] sm:$0xff]  ;;  %v96_v11 = vld [vmem:[%s1066_s1 + $0x18] sm:$0xff]  ;;  %v95_v12 = vld [vmem:[%s1066_s1 + $0x10] sm:$0xff] }
   0x9   :  { %134 = vmatpush.msra.mxu0 %v100_v4  ;;  %v40_v10 = vld [vmem:[%s1065_s0 + $0x28] sm:$0xff]  ;;  %v42_v14 = vld [vmem:[%s1065_s0 + $0x38] sm:$0xff]  ;;  %v41_v15 = vld [vmem:[%s1065_s0 + $0x30] sm:$0xff] }
   0xa   :  { %v94_v13 = vld [vmem:[%s1066_s1 + $0x8] sm:$0xff]  ;;  %v93_v16 = vld [vmem:[%s1066_s1] sm:$0xff]  ;;  %v182_v30 = vld [vmem:[#allocation2 + $0x30] sm:$0xff] }
   0xb   :  { %135 = vmatpush.msra.mxu0 %v99_v5  ;;  %v185_v29 = vld [vmem:[#allocation2 + $0x48] sm:$0xff]  ;;  %v179_v31 = vld [vmem:[#allocation2 + $0x18] sm:$0xff]  ;;  %v176_v39 = vld [vmem:[#allocation2] sm:$0xff] }
   0xc   :  { %635 = vmatpush.msra.mxu1 %v185_v29  ;;  %v186_v40 = vld [vmem:[#allocation2 + $0x50] sm:$0xff]  ;;  %v187_v41 = vld [vmem:[#allocation2 + $0x58] sm:$0xff]  ;;  %v184_v43 = vld [vmem:[#allocation2 + $0x40] sm:$0xff] }
   0xd   :  { %136 = vmatpush.msra.mxu0 %v98_v6  ;;  %v183_v42 = vld [vmem:[#allocation2 + $0x38] sm:$0xff]  ;;  %639 = vmatpush.msra.mxu2 %v186_v40  ;;  %v180_v44 = vld [vmem:[#allocation2 + $0x20] sm:$0xff]  ;;  %v181_v45 = vld [vmem:[#allocation2 + $0x28] sm:$0xff] }
   0xe   :  { %636 = vmatpush.msra.mxu1 %v182_v30  ;;  %643 = vmatpush.msra.mxu3 %v187_v41  ;;  %v177_v46 = vld [vmem:[#allocation2 + $0x8] sm:$0xff]  ;;  %v178_v47 = vld [vmem:[#allocation2 + $0x10] sm:$0xff]  ;;  %v379_v49 = vld [vmem:[#allocation2 + $0xb8] sm:$0xff] }
   0xf   :  { %55 = vperm.xlu1 %653, %v38_v7   ;;  %137 = vmatpush.msra.mxu0 %v97_v9  ;;  %v378_v48 = vld [vmem:[#allocation2 + $0xb0] sm:$0xff]  ;;  %v377_v50 = vld [vmem:[#allocation2 + $0xa8] sm:$0xff]  ;;  %v375_v51 = vld [vmem:[#allocation2 + $0x98] sm:$0xff] }
  0x10   :  { %49 = vperm.xlu0 %652, %v36_v8   ;;  %61 = vperm.xlu2 %654, %v40_v10   ;;  %v376_v52 = vld [vmem:[#allocation2 + $0xa0] sm:$0xff]  ;;  %v374_v53 = vld [vmem:[#allocation2 + $0x90] sm:$0xff]  ;;  %v373_v56 = vld [vmem:[#allocation2 + $0x88] sm:$0xff] }
  0x11   :  { %138 = vmatpush.msra.mxu0 %v96_v11  ;;  %637 = vmatpush.msra.mxu1 %v179_v31  ;;  %v372_v55 = vld [vmem:[#allocation2 + $0x80] sm:$0xff]  ;;  %v371_v58 = vld [vmem:[#allocation2 + $0x78] sm:$0xff]  ;;  %v369_v60 = vld [vmem:[#allocation2 + $0x68] sm:$0xff] }
  0x12   :  { %640 = vmatpush.msra.mxu2 %v183_v42  ;;  %644 = vmatpush.msra.mxu3 %v184_v43  ;;  %v370_v61 = vld [vmem:[#allocation2 + $0x70] sm:$0xff]  ;;  %v368_v63 = vld [vmem:[#allocation2 + $0x60] sm:$0xff] }
  0x13   :  { %139 = vmatpush.msra.mxu0 %v95_v12  ;;  %638 = vmatpush.msra.mxu1 %v176_v39  ;;  %v188_v4 = vld [vmem:[%s1068_s3] sm:$0x7] }
  0x14   :  { %641 = vmatpush.msra.mxu2 %v180_v44  ;;  %645 = vmatpush.msra.mxu3 %v181_v45  ;;  %v858_v5 = vperm.slane %v188_v4, 0  ;;  %v864_v8 = vperm.slane %v188_v4, 1 }
  0x15   :  { %140 = vmatpush.msra.mxu0 %v94_v13  ;;  %401 = vmatpush.msrb.mxu1 %v377_v50  ;;  %v874_v13 = vperm.slane %v188_v4, 2 }
  0x16   :  { %642 = vmatpush.msra.mxu2 %v177_v46  ;;  %646 = vmatpush.msra.mxu3 %v178_v47 }
  0x17   :  { %67 = vperm.xlu1 %653, %v42_v14   ;;  %141 = vmatpush.msra.mxu0 %v93_v16 }
  0x18   :  { %64 = vperm.xlu0 %652, %v41_v15   ;;  %442 = vmatpush.msrb.mxu2 %v378_v48 }
  0x19   :  { %232 = vmatpush.msrb.mxu0 %v185_v29  ;;  %483 = vmatpush.msrb.mxu3 %v379_v49 }
  0x1a   :  { %443 = vmatpush.msrb.mxu2 %v375_v51  ;;  %402 = vmatpush.msrb.mxu1 %v374_v53 }
  0x1b   :  { %233 = vmatpush.msrb.mxu0 %v182_v30  ;;  %484 = vmatpush.msrb.mxu3 %v376_v52  ;;  %v586_v52 = vld [vmem:[%s1068_s3 + $0x3] sm:$0x7] }
  0x1c   :  { %444 = vmatpush.msrb.mxu2 %v372_v55  ;;  %403 = vmatpush.msrb.mxu1 %v371_v58  ;;  %v955_v53 = vperm.slane %v586_v52, 0 }
  0x1d   :  { %234 = vmatpush.msrb.mxu0 %v179_v31  ;;  %485 = vmatpush.msrb.mxu3 %v373_v56 }
  0x1e   :  { %445 = vmatpush.msrb.mxu2 %v369_v60  ;;  %404 = vmatpush.msrb.mxu1 %v368_v63  ;;  %v969_v60 = vperm.slane %v586_v52, 1 }
  0x1f   :  { %235 = vmatpush.msrb.mxu0 %v176_v39  ;;  %486 = vmatpush.msrb.mxu3 %v370_v61  ;;  %v971_v61 = vperm.slane %v586_v52, 2 }
  0x62   :  { %v59_v28 = vpop.permute.xlu2 %58 }
  0x63   :  { %vm73_vm5 = vcmp.eq.s32.totalorder %v59_v28, %v44_v18 }
  0x64   :  { %v550_v32 = vsel %vm73_vm5, 1.0, %v685_v20 }
  0x6a   :  { %v62_v33 = vpop.permute.xlu2 %61 }
  0x6b   :  { %vm74_vm6 = vcmp.eq.s32.totalorder %v62_v33, %v44_v18 }
  0x6c   :  { %v551_v34 = vsel %vm74_vm6, 1.0, %v685_v20 }
  0x79   :  { %v53_v24 = vpop.permute.xlu1 %52 }
  0x7a   :  { %v47_v19 = vpop.permute.xlu0 %46  ;;  %vm71_vm3 = vcmp.eq.s32.totalorder %v53_v24, %v44_v18 }
  0x7b   :  { %vm69_vm1 = vcmp.eq.s32.totalorder %v47_v19, %v44_v18  ;;  %v548_v25 = vsel %vm71_vm3, 1.0, %v685_v20 }
  0x7c   :  { %v546_v21 = vsel %vm69_vm1, 1.0, %v685_v20 }
  0x7d   :  { %554 = vmatmul.msk.f32.vlgmr.msra.gmra.mxu0 %vm101_vm0, %v546_v21 }
  0x7e   :  { %273 = vmatpush.msra.mxu0 %v186_v40 }
  0x80   :  { %274 = vmatpush.msra.mxu0 %v183_v42 }
  0x81   :  { %v56_v26 = vpop.permute.xlu1 %55 }
  0x82   :  { %v50_v22 = vpop.permute.xlu0 %49  ;;  %vm72_vm4 = vcmp.eq.s32.totalorder %v56_v26, %v44_v18  ;;  %275 = vmatpush.msra.mxu0 %v180_v44 }
  0x83   :  { %vm70_vm2 = vcmp.eq.s32.totalorder %v50_v22, %v44_v18  ;;  %v549_v27 = vsel %vm72_vm4, 1.0, %v685_v20 }
  0x84   :  { %v547_v23 = vsel %vm70_vm2, 1.0, %v685_v20  ;;  %276 = vmatpush.msra.mxu0 %v177_v46 }
  0x85   :  { %555 = vmatmul.msk.f32.gmra.mxu0 %vm101_vm0, %v547_v23 }
  0x89   :  { %v68_v37 = vpop.permute.xlu1 %67 }
  0x8a   :  { %v65_v35 = vpop.permute.xlu0 %64  ;;  %vm76_vm8 = vcmp.eq.s32.totalorder %v68_v37, %v44_v18 }
  0x8b   :  { %vm75_vm7 = vcmp.eq.s32.totalorder %v65_v35, %v44_v18  ;;  %v553_v38 = vsel %vm76_vm8, 1.0, %v685_v20 }
  0x8c   :  { %v552_v36 = vsel %vm75_vm7, 1.0, %v685_v20 }
  0x8d   :  { %556 = vmatmul.msk.f32.gmra.mxu0 %vm101_vm0, %v548_v25 }
  0x95   :  { %557 = vmatmul.msk.f32.gmra.mxu0 %vm101_vm0, %v549_v27 }
  0x9d   :  { %558 = vmatmul.msk.f32.gmra.mxu0 %vm101_vm0, %v550_v32 }
  0xa5   :  { %559 = vmatmul.msk.f32.gmra.mxu0 %vm101_vm0, %v551_v34 }
  0xad   :  { %560 = vmatmul.msk.f32.gmra.mxu0 %vm101_vm0, %v552_v36 }
  0xb5   :  { %561 = vmatmul.msk.f32.gmra.mxu0 %vm101_vm0, %v553_v38 }
  0xfa   :  { %v143_v54 = vpop.f32.mrf.mxu0 }
  0xfb   :  { %168 = vst.msk [vmem:[%s1069_s4] sm:$0xff] %vm167_vm9, %v143_v54  ;;  %562 = vmatmul.msk.f32.vlgmr.msrb.gmra.mxu0 %vm167_vm9, %v143_v54 }
  0xfc   :  { %314 = vmatpush.msrb.mxu0 %v187_v41 }
  0xfe   :  { %315 = vmatpush.msrb.mxu0 %v184_v43 }
 0x100   :  { %316 = vmatpush.msrb.mxu0 %v181_v45 }
 0x102   :  { %v146_v57 = vpop.f32.mrf.mxu0  ;;  %317 = vmatpush.msrb.mxu0 %v178_v47 }
 0x103   :  { %169 = vst.msk [vmem:[%s1069_s4 + $0x8] sm:$0xff] %vm167_vm9, %v146_v57  ;;  %563 = vmatmul.msk.f32.vlgmr.msra.gmra.mxu1 %vm167_vm9, %v146_v57  ;;  %570 = vmatmul.msk.f32.vlgmr.msra.gmra.mxu0 %vm167_vm9, %v143_v54 }
 0x104   :  { %571 = vmatmul.msk.f32.vlgmr.msra.gmra.mxu2 %vm167_vm9, %v146_v57  ;;  %579 = vmatmul.msk.f32.vlgmr.msra.gmra.mxu3 %vm167_vm9, %v146_v57 }
 0x10a   :  { %v149_v59 = vpop.f32.mrf.mxu0 }
 0x10b   :  { %170 = vst.msk [vmem:[%s1069_s4 + $0x10] sm:$0xff] %vm167_vm9, %v149_v59  ;;  %564 = vmatmul.msk.f32.gmra.mxu1 %vm167_vm9, %v149_v59  ;;  %578 = vmatmul.msk.f32.vlgmr.msrb.gmra.mxu0 %vm167_vm9, %v143_v54 }
 0x10c   :  { %572 = vmatmul.msk.f32.gmra.mxu2 %vm167_vm9, %v149_v59  ;;  %580 = vmatmul.msk.f32.gmra.mxu3 %vm167_vm9, %v149_v59 }
 0x112   :  { %v152_v62 = vpop.f32.mrf.mxu0 }
 0x113   :  { %171 = vst.msk [vmem:[%s1069_s4 + $0x18] sm:$0xff] %vm167_vm9, %v152_v62  ;;  %565 = vmatmul.msk.f32.gmra.mxu1 %vm167_vm9, %v152_v62 }
 0x114   :  { %573 = vmatmul.msk.f32.gmra.mxu2 %vm167_vm9, %v152_v62  ;;  %581 = vmatmul.msk.f32.gmra.mxu3 %vm167_vm9, %v152_v62 }
 0x11a   :  { %v155_v0 = vpop.f32.mrf.mxu0 }
 0x11b   :  { %172 = vst.msk [vmem:[%s1069_s4 + $0x20] sm:$0xff] %vm167_vm9, %v155_v0  ;;  %566 = vmatmul.msk.f32.gmra.mxu1 %vm167_vm9, %v155_v0 }
 0x11c   :  { %574 = vmatmul.msk.f32.gmra.mxu2 %vm167_vm9, %v155_v0  ;;  %582 = vmatmul.msk.f32.gmra.mxu3 %vm167_vm9, %v155_v0 }
 0x122   :  { %v158_v1 = vpop.f32.mrf.mxu0 }
 0x123   :  { %173 = vst.msk [vmem:[%s1069_s4 + $0x28] sm:$0xff] %vm167_vm9, %v158_v1  ;;  %567 = vmatmul.msk.f32.gmra.mxu1 %vm167_vm9, %v158_v1 }
 0x124   :  { %575 = vmatmul.msk.f32.gmra.mxu2 %vm167_vm9, %v158_v1  ;;  %583 = vmatmul.msk.f32.gmra.mxu3 %vm167_vm9, %v158_v1 }
 0x12a   :  { %v161_v2 = vpop.f32.mrf.mxu0 }
 0x12b   :  { %174 = vst.msk [vmem:[%s1069_s4 + $0x30] sm:$0xff] %vm167_vm9, %v161_v2  ;;  %568 = vmatmul.msk.f32.gmra.mxu1 %vm167_vm9, %v161_v2 }
 0x12c   :  { %576 = vmatmul.msk.f32.gmra.mxu2 %vm167_vm9, %v161_v2  ;;  %584 = vmatmul.msk.f32.gmra.mxu3 %vm167_vm9, %v161_v2 }
 0x132   :  { %v164_v3 = vpop.f32.mrf.mxu0 }
 0x133   :  { %175 = vst.msk [vmem:[%s1069_s4 + $0x38] sm:$0xff] %vm167_vm9, %v164_v3  ;;  %569 = vmatmul.msk.f32.gmra.mxu1 %vm167_vm9, %v164_v3 }
 0x134   :  { %577 = vmatmul.msk.f32.gmra.mxu2 %vm167_vm9, %v164_v3  ;;  %585 = vmatmul.msk.f32.gmra.mxu3 %vm167_vm9, %v164_v3 }
 0x13b   :  { %587 = vmatmul.msk.f32.vlgmr.msrb.gmra.mxu1 %vm167_vm9, %v143_v54 }
 0x13c   :  { %595 = vmatmul.msk.f32.vlgmr.msrb.gmra.mxu2 %vm167_vm9, %v143_v54  ;;  %603 = vmatmul.msk.f32.vlgmr.msrb.gmra.mxu3 %vm167_vm9, %v143_v54 }
 0x143   :  { %588 = vmatmul.msk.f32.gmra.mxu1 %vm167_vm9, %v146_v57 }
 0x144   :  { %596 = vmatmul.msk.f32.gmra.mxu2 %vm167_vm9, %v146_v57  ;;  %604 = vmatmul.msk.f32.gmra.mxu3 %vm167_vm9, %v146_v57 }
 0x14b   :  { %589 = vmatmul.msk.f32.gmra.mxu1 %vm167_vm9, %v149_v59 }
 0x14c   :  { %597 = vmatmul.msk.f32.gmra.mxu2 %vm167_vm9, %v149_v59  ;;  %605 = vmatmul.msk.f32.gmra.mxu3 %vm167_vm9, %v149_v59 }
 0x153   :  { %590 = vmatmul.msk.f32.gmra.mxu1 %vm167_vm9, %v152_v62 }
 0x154   :  { %598 = vmatmul.msk.f32.gmra.mxu2 %vm167_vm9, %v152_v62  ;;  %606 = vmatmul.msk.f32.gmra.mxu3 %vm167_vm9, %v152_v62 }
 0x15b   :  { %591 = vmatmul.msk.f32.gmra.mxu1 %vm167_vm9, %v155_v0 }
 0x15c   :  { %599 = vmatmul.msk.f32.gmra.mxu2 %vm167_vm9, %v155_v0  ;;  %607 = vmatmul.msk.f32.gmra.mxu3 %vm167_vm9, %v155_v0 }
 0x163   :  { %592 = vmatmul.msk.f32.gmra.mxu1 %vm167_vm9, %v158_v1 }
 0x164   :  { %600 = vmatmul.msk.f32.gmra.mxu2 %vm167_vm9, %v158_v1  ;;  %608 = vmatmul.msk.f32.gmra.mxu3 %vm167_vm9, %v158_v1 }
 0x16b   :  { %593 = vmatmul.msk.f32.gmra.mxu1 %vm167_vm9, %v161_v2 }
 0x16c   :  { %601 = vmatmul.msk.f32.gmra.mxu2 %vm167_vm9, %v161_v2  ;;  %609 = vmatmul.msk.f32.gmra.mxu3 %vm167_vm9, %v161_v2 }
 0x173   :  { %594 = vmatmul.msk.f32.gmra.mxu1 %vm167_vm9, %v164_v3 }
 0x174   :  { %602 = vmatmul.msk.f32.gmra.mxu2 %vm167_vm9, %v164_v3  ;;  %610 = vmatmul.msk.f32.gmra.mxu3 %vm167_vm9, %v164_v3 }
 0x178   :  { %v237_v6 = vpop.f32.mrf.mxu0 }
 0x179   :  { %v238_v7 = vadd.f32 %v237_v6, %v858_v5 }
 0x17b   :  { %343 = vst [vmem:[%s1070_s5] sm:$0xff] %v238_v7 }
 0x180   :  { %v240_v9 = vpop.f32.mrf.mxu1  ;;  %v278_v10 = vpop.f32.mrf.mxu0 }
 0x181   :  { %v241_v11 = vadd.f32 %v240_v9, %v858_v5  ;;  %v279_v12 = vadd.f32 %v278_v10, %v864_v8 }
 0x183   :  { %346 = vst [vmem:[%s1070_s5 + $0x18] sm:$0xff] %v241_v11 }
 0x184   :  { %344 = vst [vmem:[%s1070_s5 + $0x8] sm:$0xff] %v279_v12 }
 0x187   :  { %v281_v14 = vpop.f32.mrf.mxu2  ;;  %v322_v15 = vpop.f32.mrf.mxu3 }
 0x188   :  { %v282_v16 = vadd.f32 %v281_v14, %v864_v8  ;;  %v323_v17 = vadd.f32 %v322_v15, %v874_v13  ;;  %v243_v18 = vpop.f32.mrf.mxu1  ;;  %v319_v19 = vpop.f32.mrf.mxu0 }
 0x189   :  { %v244_v20 = vadd.f32 %v243_v18, %v858_v5  ;;  %v320_v21 = vadd.f32 %v319_v19, %v874_v13 }
 0x18a   :  { %347 = vst [vmem:[%s1070_s5 + $0x20] sm:$0xff] %v282_v16 }
 0x18b   :  { %348 = vst [vmem:[%s1070_s5 + $0x28] sm:$0xff] %v323_v17 }
 0x18c   :  { %349 = vst [vmem:[%s1070_s5 + $0x30] sm:$0xff] %v244_v20 }
 0x18d   :  { %345 = vst [vmem:[%s1070_s5 + $0x10] sm:$0xff] %v320_v21 }
 0x18f   :  { %v284_v22 = vpop.f32.mrf.mxu2  ;;  %v325_v23 = vpop.f32.mrf.mxu3 }
 0x190   :  { %v285_v24 = vadd.f32 %v284_v22, %v864_v8  ;;  %v326_v25 = vadd.f32 %v325_v23, %v874_v13  ;;  %v246_v26 = vpop.f32.mrf.mxu1 }
 0x191   :  { %v247_v27 = vadd.f32 %v246_v26, %v858_v5 }
 0x192   :  { %350 = vst [vmem:[%s1070_s5 + $0x38] sm:$0xff] %v285_v24 }
 0x193   :  { %351 = vst [vmem:[%s1070_s5 + $0x40] sm:$0xff] %v326_v25 }
 0x194   :  { %352 = vst [vmem:[%s1070_s5 + $0x48] sm:$0xff] %v247_v27 }
 0x197   :  { %v287_v28 = vpop.f32.mrf.mxu2  ;;  %v328_v29 = vpop.f32.mrf.mxu3 }
 0x198   :  { %v288_v30 = vadd.f32 %v287_v28, %v864_v8  ;;  %v329_v31 = vadd.f32 %v328_v29, %v874_v13  ;;  %v249_v32 = vpop.f32.mrf.mxu1 }
 0x199   :  { %v250_v33 = vadd.f32 %v249_v32, %v858_v5 }
 0x19a   :  { %353 = vst [vmem:[%s1070_s5 + $0x50] sm:$0xff] %v288_v30 }
 0x19b   :  { %354 = vst [vmem:[%s1070_s5 + $0x58] sm:$0xff] %v329_v31 }
 0x19c   :  { %355 = vst [vmem:[%s1070_s5 + $0x60] sm:$0xff] %v250_v33 }
 0x19f   :  { %v290_v34 = vpop.f32.mrf.mxu2  ;;  %v331_v35 = vpop.f32.mrf.mxu3 }
 0x1a0   :  { %v291_v36 = vadd.f32 %v290_v34, %v864_v8  ;;  %v332_v37 = vadd.f32 %v331_v35, %v874_v13  ;;  %v252_v38 = vpop.f32.mrf.mxu1 }
 0x1a1   :  { %v253_v39 = vadd.f32 %v252_v38, %v858_v5 }
 0x1a2   :  { %356 = vst [vmem:[%s1070_s5 + $0x68] sm:$0xff] %v291_v36 }
 0x1a3   :  { %357 = vst [vmem:[%s1070_s5 + $0x70] sm:$0xff] %v332_v37 }
 0x1a4   :  { %358 = vst [vmem:[%s1070_s5 + $0x78] sm:$0xff] %v253_v39 }
 0x1a7   :  { %v293_v40 = vpop.f32.mrf.mxu2  ;;  %v334_v41 = vpop.f32.mrf.mxu3 }
 0x1a8   :  { %v294_v42 = vadd.f32 %v293_v40, %v864_v8  ;;  %v335_v43 = vadd.f32 %v334_v41, %v874_v13  ;;  %v255_v44 = vpop.f32.mrf.mxu1 }
 0x1a9   :  { %v256_v45 = vadd.f32 %v255_v44, %v858_v5 }
 0x1aa   :  { %359 = vst [vmem:[%s1070_s5 + $0x80] sm:$0xff] %v294_v42 }
 0x1ab   :  { %360 = vst [vmem:[%s1070_s5 + $0x88] sm:$0xff] %v335_v43 }
 0x1ac   :  { %361 = vst [vmem:[%s1070_s5 + $0x90] sm:$0xff] %v256_v45 }
 0x1af   :  { %v296_v46 = vpop.f32.mrf.mxu2  ;;  %v337_v47 = vpop.f32.mrf.mxu3 }
 0x1b0   :  { %v297_v48 = vadd.f32 %v296_v46, %v864_v8  ;;  %v338_v49 = vadd.f32 %v337_v47, %v874_v13  ;;  %v258_v50 = vpop.f32.mrf.mxu1 }
 0x1b1   :  { %v259_v51 = vadd.f32 %v258_v50, %v858_v5 }
 0x1b2   :  { %362 = vst [vmem:[%s1070_s5 + $0x98] sm:$0xff] %v297_v48 }
 0x1b3   :  { %363 = vst [vmem:[%s1070_s5 + $0xa0] sm:$0xff] %v338_v49 }
 0x1b4   :  { %364 = vst [vmem:[%s1070_s5 + $0xa8] sm:$0xff] %v259_v51 }
 0x1b7   :  { %v299_v54 = vpop.f32.mrf.mxu2  ;;  %v340_v55 = vpop.f32.mrf.mxu3 }
 0x1b8   :  { %v300_v56 = vadd.f32 %v299_v54, %v864_v8  ;;  %v341_v57 = vadd.f32 %v340_v55, %v874_v13  ;;  %v406_v58 = vpop.f32.mrf.mxu1 }
 0x1b9   :  { %v407_v59 = vadd.f32 %v406_v58, %v955_v53 }
 0x1ba   :  { %365 = vst [vmem:[%s1070_s5 + $0xb0] sm:$0xff] %v300_v56 }
 0x1bb   :  { %366 = vst [vmem:[%s1070_s5 + $0xb8] sm:$0xff] %v341_v57 }
 0x1bc   :  { %611 = vst [vmem:[%s1070_s5 + $0xc0] sm:$0xff] %v407_v59 }
 0x1bf   :  { %v447_v62 = vpop.f32.mrf.mxu2  ;;  %v488_v63 = vpop.f32.mrf.mxu3 }
 0x1c0   :  { %v448_v0 = vadd.f32 %v447_v62, %v969_v60  ;;  %v489_v1 = vadd.f32 %v488_v63, %v971_v61  ;;  %v409_v2 = vpop.f32.mrf.mxu1 }
 0x1c1   :  { %v410_v3 = vadd.f32 %v409_v2, %v955_v53 }
 0x1c2   :  { %612 = vst [vmem:[%s1070_s5 + $0xc8] sm:$0xff] %v448_v0 }
 0x1c3   :  { %613 = vst [vmem:[%s1070_s5 + $0xd0] sm:$0xff] %v489_v1 }
 0x1c4   :  { %614 = vst [vmem:[%s1070_s5 + $0xd8] sm:$0xff] %v410_v3 }
 0x1c7   :  { %v450_v4 = vpop.f32.mrf.mxu2  ;;  %v491_v5 = vpop.f32.mrf.mxu3 }
 0x1c8   :  { %v451_v6 = vadd.f32 %v450_v4, %v969_v60  ;;  %v492_v7 = vadd.f32 %v491_v5, %v971_v61  ;;  %v412_v8 = vpop.f32.mrf.mxu1 }
 0x1c9   :  { %v413_v9 = vadd.f32 %v412_v8, %v955_v53 }
 0x1ca   :  { %615 = vst [vmem:[%s1070_s5 + $0xe0] sm:$0xff] %v451_v6 }
 0x1cb   :  { %616 = vst [vmem:[%s1070_s5 + $0xe8] sm:$0xff] %v492_v7 }
 0x1cc   :  { %617 = vst [vmem:[%s1070_s5 + $0xf0] sm:$0xff] %v413_v9 }
 0x1cf   :  { %v453_v10 = vpop.f32.mrf.mxu2  ;;  %v494_v11 = vpop.f32.mrf.mxu3 }
 0x1d0   :  { %v454_v12 = vadd.f32 %v453_v10, %v969_v60  ;;  %v495_v13 = vadd.f32 %v494_v11, %v971_v61  ;;  %v415_v14 = vpop.f32.mrf.mxu1 }
 0x1d1   :  { %v416_v15 = vadd.f32 %v415_v14, %v955_v53 }
 0x1d2   :  { %618 = vst [vmem:[%s1070_s5 + $0xf8] sm:$0xff] %v454_v12 }
 0x1d3   :  { %619 = vst [vmem:[%s1070_s5 + $0x100] sm:$0xff] %v495_v13 }
 0x1d4   :  { %620 = vst [vmem:[%s1070_s5 + $0x108] sm:$0xff] %v416_v15 }
 0x1d7   :  { %v456_v16 = vpop.f32.mrf.mxu2  ;;  %v497_v17 = vpop.f32.mrf.mxu3 }
 0x1d8   :  { %v457_v18 = vadd.f32 %v456_v16, %v969_v60  ;;  %v498_v19 = vadd.f32 %v497_v17, %v971_v61  ;;  %v418_v20 = vpop.f32.mrf.mxu1 }
 0x1d9   :  { %v419_v21 = vadd.f32 %v418_v20, %v955_v53 }
 0x1da   :  { %621 = vst [vmem:[%s1070_s5 + $0x110] sm:$0xff] %v457_v18 }
 0x1db   :  { %622 = vst [vmem:[%s1070_s5 + $0x118] sm:$0xff] %v498_v19 }
 0x1dc   :  { %623 = vst [vmem:[%s1070_s5 + $0x120] sm:$0xff] %v419_v21 }
 0x1df   :  { %v459_v22 = vpop.f32.mrf.mxu2  ;;  %v500_v23 = vpop.f32.mrf.mxu3 }
 0x1e0   :  { %v460_v24 = vadd.f32 %v459_v22, %v969_v60  ;;  %v501_v25 = vadd.f32 %v500_v23, %v971_v61  ;;  %v421_v26 = vpop.f32.mrf.mxu1 }
 0x1e1   :  { %v422_v27 = vadd.f32 %v421_v26, %v955_v53 }
 0x1e2   :  { %624 = vst [vmem:[%s1070_s5 + $0x128] sm:$0xff] %v460_v24 }
 0x1e3   :  { %625 = vst [vmem:[%s1070_s5 + $0x130] sm:$0xff] %v501_v25 }
 0x1e4   :  { %626 = vst [vmem:[%s1070_s5 + $0x138] sm:$0xff] %v422_v27 }
 0x1e7   :  { %v462_v28 = vpop.f32.mrf.mxu2  ;;  %v503_v29 = vpop.f32.mrf.mxu3 }
 0x1e8   :  { %v463_v30 = vadd.f32 %v462_v28, %v969_v60  ;;  %v504_v31 = vadd.f32 %v503_v29, %v971_v61  ;;  %v424_v32 = vpop.f32.mrf.mxu1 }
 0x1e9   :  { %v425_v33 = vadd.f32 %v424_v32, %v955_v53 }
 0x1ea   :  { %627 = vst [vmem:[%s1070_s5 + $0x140] sm:$0xff] %v463_v30 }
 0x1eb   :  { %628 = vst [vmem:[%s1070_s5 + $0x148] sm:$0xff] %v504_v31 }
 0x1ec   :  { %629 = vst [vmem:[%s1070_s5 + $0x150] sm:$0xff] %v425_v33 }
 0x1ef   :  { %v465_v34 = vpop.f32.mrf.mxu2  ;;  %v506_v35 = vpop.f32.mrf.mxu3 }
 0x1f0   :  { %v466_v36 = vadd.f32 %v465_v34, %v969_v60  ;;  %v507_v37 = vadd.f32 %v506_v35, %v971_v61  ;;  %v427_v38 = vpop.f32.mrf.mxu1 }
 0x1f1   :  { %v428_v39 = vadd.f32 %v427_v38, %v955_v53 }
 0x1f2   :  { %630 = vst [vmem:[%s1070_s5 + $0x158] sm:$0xff] %v466_v36 }
 0x1f3   :  { %631 = vst [vmem:[%s1070_s5 + $0x160] sm:$0xff] %v507_v37 }
 0x1f4   :  { %632 = vst [vmem:[%s1070_s5 + $0x168] sm:$0xff] %v428_v39 }
 0x1f7   :  { %v468_v40 = vpop.f32.mrf.mxu2  ;;  %v509_v41 = vpop.f32.mrf.mxu3 }
 0x1f8   :  { %v469_v42 = vadd.f32 %v468_v40, %v969_v60  ;;  %v510_v43 = vadd.f32 %v509_v41, %v971_v61 }
 0x1fa   :  { %633 = vst [vmem:[%s1070_s5 + $0x170] sm:$0xff] %v469_v42 }
 0x1fb   :  { %634 = vst [vmem:[%s1070_s5 + $0x178] sm:$0xff] %v510_v43 }
 0x1fc   :  { %545 = vsyncpa [#allocation3], 1 }

// kernel: encoder_forward.3
= control target key start
LH: loop header
LB: loop body
LE: loop exit
PB: predicated region body
PF: predicated region fallthrough
CT: control target
= control target key end

     0   :  { %8 = vsyncpa [#allocation3], 0  ;;  %s2422_s0 = inlined_call_operand.vmem [shape: f32[2,8,8,384], index: 0, kind: input, shape index: {}]   ;;  %s2423_s1 = inlined_call_operand.hbm [shape: f32[2,128,384], index: 1, kind: input, shape index: {}]   ;;  %s2424_s2 = inlined_call_operand.vmem [shape: f32[2,1,128], index: 2, kind: input, shape index: {}]   ;;  %s2425_s3 = inlined_call_operand.vmem [shape: f32[2,8,128], index: 3, kind: output, shape index: {}]  }
   0x1   :  { %10 = vsyncpa [#allocation3 + $0x1], 0  ;;  %s1607_s12 = smov 0   ;;  %s1609_s13 = smov 0  }
   0x2   :  { %s1611_s14 = smov 0   ;;  %s1613_s15 = smov 0  }
   0x3 LB: > { %s1626_s16 = sadd.s32 4294967295, %s1582_s15   ;;  %s1629_s17 = sadd.s32 1, %s1582_s15   ;;  %s1582_s15 = sphi %s1613_s15, %s2470_s15   ;;  %s1578_s14 = sphi %s1611_s14, %s2469_s14   ;;  %s1574_s13 = sphi %s1609_s13, %s2468_s13   ;;  %s1570_s12 = sphi %s1607_s12, %s2467_s12  }
   0x4   : > { %s46_s18 = ssub.s32 %s1582_s15, %s1629_s17  ;;  %s49_s19 = sadd.s32 1, %s1578_s14 }
   0x5   : > { %p47_p0 = scmp.eq.s32.totalorder %s46_s18, 0  ;;  %p56_p1 = scmp.ne.s32.totalorder %s1578_s14, %s1574_s13 }
   0x6   : > { %p57_p2 = scmp.eq.s32.totalorder %s1582_s15, 0  ;;  %p62_p3 = scmp.ne.s32.totalorder %s1574_s13, %s1570_s12 }
   0x7   : > { %s1639_s20 = scalar_select %p47_p0, %s1578_s14, %s49_s19  }
   0x8   : > { %p58_p4 = por %p57_p2, %p56_p1  ;;  %p63_p5 = scmp.eq.s32.totalorder %s1626_s16, 0 }
   0x9   : > { %p1352_p6 = scmp.lt.s32.totalorder %s1582_s15, 2  ;;  %s146_s22 = sand.u32 1, %s1578_s14  }
   0xa   : > { %p1645_p7 = por %p63_p5, %p62_p3  ;;  %s1342_s23 = smul.u32 384, %s146_s22 }
   0xb   : > { %s1343_s24 = smul.u32 384, %s1582_s15  ;;  %p1651_p8 = pnand %p1352_p6, %p58_p4 }
   0xc   : > { %s150_s29 = scalar_lea.vmem [#allocation2], %s1342_s23  ;;  %p1305_p9 = scmp.ge.s32.totalorder %s1582_s15, 1 }
   0xd   : > { %s155_s28 = scalar_lea.hbm %s2423_s1, %s1343_s24  ;;  %s158_s30 = sshll.u32 %s150_s29, 4  ;;  %s159_s30 = int_to_ptr.vmem [resolvable:$true] %s158_s30 }
   0xe   : > { %s156_s4 = sshll.u32 %s155_s28, 4  ;;  %s147_s5 = scalar_lea.sflag [#allocation3], %s146_s22  ;;  %s157_s4 = int_to_ptr.hbm [resolvable:$true] %s156_s4 }
   0xf   : > { %s1518_s6 = sshra.s32 %s157_s4, 4  ;;  %p1522_p11 = pneg %p1651_p8  ;;  %s1519_s6 = int_to_ptr.hbm [resolvable:$true] %s1518_s6 }
  0x10   : > { %s1520_s7 = scalar_lea.hbm %s1519_s6, 384  ;;  %s1525_s10 = scalar_lea.hbm %s2423_s1, 768 }
  0x11   : > { %p1521_p10 = scmp.ne.s32.totalorder %s1519_s6, %s1520_s7  ;;  %p1526_p0 = scmp.lt.s32.totalorder %s1519_s6, %s2423_s1 }
  0x12   : > { %p1527_p1 = scmp.lt.s32.totalorder %s1525_s10, %s1520_s7 }
  0x13   : > { %p1523_p12 = pnand %p1522_p11, %p1521_p10 }
  0x14   : > { %p1528_p2 = por %p1527_p1, %p1526_p0 }
  0x15   : > { %p1524_p13 = pneg %p1523_p12 }
  0x17   : > { %p1529_p3 = pnand %p1528_p2, %p1524_p13 }
  0x19   : > { %1532 = shalt.err (!%p1529_p3)
}
  0x1a   : > { %s1584_s18 = smov 384   ;;  %s1585_s19 = smov 24  }
  0x1b   : > { %1351 = dma.hbm_to_vmem [thread:$0]  (!%p1651_p8), %s157_s4, 6144, %s159_s30, %s147_s5, %s1584_s18, %s1584_s18, %s1585_s19  }
  0x1c   : > { %p172_p4 = scmp.lt.s32.totalorder %s1582_s15, 3 }
  0x1e   : > { %p173_p6 = pnand %p1305_p9, %p172_p4 }
  0x20   : > { %176 = sbr.rel (%p173_p6) target bundleno = 1467 (0x5bb), region = 32 }
  0x25   : > { %s178_s22 = sand.u32 1, %s1574_s13  }
  0x26   : > { %s1344_s23 = smul.u32 384, %s178_s22  ;;  %s179_s24 = scalar_lea.sflag [#allocation3], %s178_s22 }
  0x28   : > { %s1673_s26 = scalar_lea.vmem [#allocation2], %s1344_s23 }
  0x29   : > { %1565 = dma.done.wait (%p1645_p7), %s179_s24, 6144  }
  0x2a   : > { %1567 = vsyncadd (%p1645_p7), %s179_s24, 4294961152  ;;  %v1680_v0 = vld [vmem:[%s1673_s26 + $0x168] sm:$0xff]  ;;  %v1683_v1 = vld [vmem:[%s1673_s26 + $0x170] sm:$0xff]  ;;  %p213_p7 = scmp.lt.s32.totalorder %s1626_s16, 1  ;;  %v1586_v44 = vmov 0.0  }
  0x2b   : > { %v1686_v2 = vld [vmem:[%s1673_s26 + $0x150] sm:$0xff]  ;;  %282 = vmatpush.msra.mxu0 %v1680_v0  ;;  %302 = vmatpush.msra.mxu1 %v1683_v1  ;;  %v1691_v3 = vld [vmem:[%s1673_s26 + $0x158] sm:$0xff]  ;;  %v1697_v5 = vld [vmem:[%s1673_s26 + $0x140] sm:$0xff]  ;;  %s275_s28 = scalar_select %p63_p5, 0, 7 }
  0x2c   : > { %v1694_v4 = vld [vmem:[%s1673_s26 + $0x138] sm:$0xff]  ;;  %400 = vmatpush.msra.mxu3 %v1680_v0  ;;  %v1703_v6 = vld [vmem:[%s1673_s26 + $0x120] sm:$0xff]  ;;  %v1706_v7 = vld [vmem:[%s1673_s26 + $0x128] sm:$0xff]  ;;  %s1765_s15 = scalar_select %p213_p7, %s1626_s16, 1 }
  0x2d   : > { %283 = vmatpush.msra.mxu0 %v1686_v2  ;;  %303 = vmatpush.msra.mxu1 %v1691_v3  ;;  %v1712_v8 = vld [vmem:[%s1673_s26 + $0x108] sm:$0xff]  ;;  %v1715_v9 = vld [vmem:[%s1673_s26 + $0x110] sm:$0xff]  ;;  %v1724_v11 = vld [vmem:[%s1673_s26 + $0xf8] sm:$0xff]  ;;  %s1334_s30 = smul.u32 24, %s275_s28 }
  0x2e   : > { %401 = vmatpush.msra.mxu3 %v1686_v2  ;;  %v1721_v10 = vld [vmem:[%s1673_s26 + $0xf0] sm:$0xff]  ;;  %v1727_v12 = vld [vmem:[%s1673_s26 + $0x178] sm:$0xff]  ;;  %v1733_v13 = vld [vmem:[%s1673_s26 + $0x160] sm:$0xff]  ;;  %s1784_s27 = scalar_lea.vmem %s2424_s2, %s1765_s15  ;;  %s1345_s29 = smul.u32 192, %s1765_s15 }
  0x2f   : > { %284 = vmatpush.msra.mxu0 %v1694_v4  ;;  %304 = vmatpush.msra.mxu1 %v1697_v5  ;;  %v1737_v14 = vld [vmem:[%s1673_s26 + $0xd8] sm:$0xff]  ;;  %v1740_v15 = vld [vmem:[%s1673_s26 + $0xe0] sm:$0xff]  ;;  %v1747_v16 = vld [vmem:[%s1673_s26 + $0x148] sm:$0xff]  ;;  %s393_s8 = scalar_select %p63_p5, 1, 6 }
  0x30   : > { %402 = vmatpush.msra.mxu3 %v1694_v4  ;;  %322 = vmatpush.msra.mxu2 %v1727_v12  ;;  %v1750_v17 = vld [vmem:[%s1673_s26 + $0xc0] sm:$0xff]  ;;  %v1753_v18 = vld [vmem:[%s1673_s26 + $0xc8] sm:$0xff]  ;;  %v1760_v19 = vld [vmem:[%s1673_s26 + $0x130] sm:$0xff]  ;;  %s2017_s6 = scalar_lea.vmem %s2422_s0, %s1345_s29  ;;  %s1307_s16 = sshll.u32 %s1765_s15, 3 }
  0x31   : > { %285 = vmatpush.msra.mxu0 %v1703_v6  ;;  %305 = vmatpush.msra.mxu1 %v1706_v7  ;;  %v1768_v20 = vld [vmem:[%s1673_s26 + $0xa8] sm:$0xff]  ;;  %v1771_v21 = vld [vmem:[%s1673_s26 + $0xb0] sm:$0xff]  ;;  %v1778_v22 = vld [vmem:[%s1673_s26 + $0x118] sm:$0xff]  ;;  %s2020_s7 = scalar_lea.vmem %s2017_s6, %s1334_s30  ;;  %s1335_s9 = smul.u32 24, %s393_s8 }
  0x32   : > { %403 = vmatpush.msra.mxu3 %v1703_v6  ;;  %323 = vmatpush.msra.mxu2 %v1733_v13  ;;  %v1787_v23 = vld [vmem:[%s1673_s26 + $0x90] sm:$0xff]  ;;  %v1790_v24 = vld [vmem:[%s1673_s26 + $0x98] sm:$0xff]  ;;  %v1797_v25 = vld [vmem:[%s1673_s26 + $0x100] sm:$0xff]  ;;  %s508_s11 = scalar_select %p63_p5, 2, 5 }
  0x33   : > { %286 = vmatpush.msra.mxu0 %v1712_v8  ;;  %306 = vmatpush.msra.mxu1 %v1715_v9  ;;  %v1800_v26 = vld [vmem:[%s1673_s26 + $0x78] sm:$0xff]  ;;  %v1803_v27 = vld [vmem:[%s1673_s26 + $0x80] sm:$0xff]  ;;  %v1810_v28 = vld [vmem:[%s1673_s26 + $0xe8] sm:$0xff]  ;;  %s2085_s10 = scalar_lea.vmem %s2017_s6, %s1335_s9 }
  0x34   : > { %404 = vmatpush.msra.mxu3 %v1712_v8  ;;  %324 = vmatpush.msra.mxu2 %v1747_v16  ;;  %v1813_v29 = vld [vmem:[%s1673_s26 + $0x60] sm:$0xff]  ;;  %v1816_v30 = vld [vmem:[%s1673_s26 + $0x68] sm:$0xff]  ;;  %v1823_v31 = vld [vmem:[%s1673_s26 + $0xd0] sm:$0xff]  ;;  %s1336_s12 = smul.u32 24, %s508_s11 }
  0x35   : > { %287 = vmatpush.msra.mxu0 %v1721_v10  ;;  %307 = vmatpush.msra.mxu1 %v1724_v11  ;;  %v1826_v32 = vld [vmem:[%s1673_s26 + $0x48] sm:$0xff]  ;;  %v1829_v33 = vld [vmem:[%s1673_s26 + $0x50] sm:$0xff]  ;;  %v1836_v34 = vld [vmem:[%s1673_s26 + $0xb8] sm:$0xff]  ;;  %s623_s19 = scalar_select %p63_p5, 3, 4 }
  0x36   : > { %405 = vmatpush.msra.mxu3 %v1721_v10  ;;  %325 = vmatpush.msra.mxu2 %v1760_v19  ;;  %v1839_v35 = vld [vmem:[%s1673_s26 + $0x30] sm:$0xff]  ;;  %v1842_v36 = vld [vmem:[%s1673_s26 + $0x38] sm:$0xff]  ;;  %v1849_v37 = vld [vmem:[%s1673_s26 + $0xa0] sm:$0xff]  ;;  %s2148_s18 = scalar_lea.vmem %s2017_s6, %s1336_s12 }
  0x37   : > { %288 = vmatpush.msra.mxu0 %v1737_v14  ;;  %308 = vmatpush.msra.mxu1 %v1740_v15  ;;  %2444 = vst [vmem:[#allocation5_spill] sm:$0xff] %v1839_v35  ;;  %v1852_v38 = vld [vmem:[%s1673_s26 + $0x18] sm:$0xff]  ;;  %v1855_v39 = vld [vmem:[%s1673_s26 + $0x20] sm:$0xff]  ;;  %v1862_v40 = vld [vmem:[%s1673_s26 + $0x88] sm:$0xff]  ;;  %s1337_s22 = smul.u32 24, %s623_s19 }
  0x38   : > { %406 = vmatpush.msra.mxu3 %v1737_v14  ;;  %326 = vmatpush.msra.mxu2 %v1778_v22  ;;  %2445 = vst [vmem:[#allocation6_spill] sm:$0xff] %v1842_v36  ;;  %v1865_v41 = vld [vmem:[%s1673_s26] sm:$0xff]  ;;  %v1868_v42 = vld [vmem:[%s1673_s26 + $0x8] sm:$0xff]  ;;  %v1876_v43 = vld [vmem:[%s1673_s26 + $0x70] sm:$0xff]  ;;  %s738_s24 = scalar_select %p63_p5, 4, 3 }
  0x39   : > { %289 = vmatpush.msra.mxu0 %v1750_v17  ;;  %309 = vmatpush.msra.mxu1 %v1753_v18  ;;  %2446 = vst [vmem:[#allocation7_spill] sm:$0xff] %v1852_v38  ;;  %v1882_v45 = vld [vmem:[%s1673_s26 + $0x58] sm:$0xff]  ;;  %v1887_v46 = vld [vmem:[%s1673_s26 + $0x40] sm:$0xff]  ;;  %v1894_v47 = vld [vmem:[%s1673_s26 + $0x28] sm:$0xff]  ;;  %s2235_s23 = scalar_lea.vmem %s2017_s6, %s1337_s22 }
  0x3a   : > { %407 = vmatpush.msra.mxu3 %v1750_v17  ;;  %327 = vmatpush.msra.mxu2 %v1797_v25  ;;  %2447 = vst [vmem:[#allocation8_spill] sm:$0xff] %v1855_v39  ;;  %v1901_v48 = vld [vmem:[%s1673_s26 + $0x10] sm:$0xff]  ;;  %v279_v49 = vld [vmem:[%s2020_s7] sm:$0xff]  ;;  %v280_v50 = vld [vmem:[%s2020_s7 + $0x8] sm:$0xff]  ;;  %s1338_s21 = smul.u32 24, %s738_s24 }
  0x3b   : > { %290 = vmatpush.msra.mxu0 %v1768_v20  ;;  %310 = vmatpush.msra.mxu1 %v1771_v21  ;;  %2448 = vst [vmem:[#allocation9_spill] sm:$0xff] %v1865_v41  ;;  %s1083_s5 = scalar_select %p63_p5, 7, 0 }
  0x3c   : > { %408 = vmatpush.msra.mxu3 %v1768_v20  ;;  %328 = vmatpush.msra.mxu2 %v1810_v28  ;;  %2449 = vst [vmem:[#allocation10_spill] sm:$0xff] %v1868_v42  ;;  %s2346_s25 = scalar_lea.vmem %s2017_s6, %s1338_s21 }
  0x3d   : > { %291 = vmatpush.msra.mxu0 %v1787_v23  ;;  %311 = vmatpush.msra.mxu1 %v1790_v24  ;;  %2450 = vst [vmem:[#allocation11_spill] sm:$0xff] %v1894_v47 }
  0x3e   : > { %409 = vmatpush.msra.mxu3 %v1787_v23  ;;  %329 = vmatpush.msra.mxu2 %v1823_v31  ;;  %2451 = vst [vmem:[#allocation12_spill] sm:$0xff] %v1901_v48 }
  0x3f   : > { %292 = vmatpush.msra.mxu0 %v1800_v26  ;;  %312 = vmatpush.msra.mxu1 %v1803_v27 }
  0x40   : > { %410 = vmatpush.msra.mxu3 %v1800_v26  ;;  %330 = vmatpush.msra.mxu2 %v1836_v34 }
  0x41   : > { %293 = vmatpush.msra.mxu0 %v1813_v29  ;;  %313 = vmatpush.msra.mxu1 %v1816_v30 }
  0x42   : > { %411 = vmatpush.msra.mxu3 %v1813_v29  ;;  %331 = vmatpush.msra.mxu2 %v1849_v37 }
  0x43   : > { %294 = vmatpush.msra.mxu0 %v1826_v32  ;;  %314 = vmatpush.msra.mxu1 %v1829_v33 }
  0x44   : > { %412 = vmatpush.msra.mxu3 %v1826_v32  ;;  %332 = vmatpush.msra.mxu2 %v1862_v40 }
  0x45   : > { %295 = vmatpush.msra.mxu0 %v1839_v35  ;;  %315 = vmatpush.msra.mxu1 %v1842_v36 }
  0x46   : > { %413 = vmatpush.msra.mxu3 %v1839_v35  ;;  %333 = vmatpush.msra.mxu2 %v1876_v43 }
  0x47   : > { %296 = vmatpush.msra.mxu0 %v1852_v38  ;;  %316 = vmatpush.msra.mxu1 %v1855_v39 }
  0x48   : > { %414 = vmatpush.msra.mxu3 %v1852_v38  ;;  %334 = vmatpush.msra.mxu2 %v1882_v45 }
  0x49   : > { %297 = vmatpush.msra.mxu0 %v1865_v41  ;;  %317 = vmatpush.msra.mxu1 %v1868_v42 }
  0x4a   : > { %298 = vmatmul.f32.vlgmr.msra.gmra.mxu0 %v1586_v44  ;;  %318 = vmatmul.f32.vlgmr.msra.gmra.mxu1 %v1586_v44 }
  0x4b   : > { %420 = vmatpush.msrb.mxu0 %v1683_v1  ;;  %440 = vmatpush.msrb.mxu1 %v1727_v12 }
  0x4c   : > { %415 = vmatpush.msra.mxu3 %v1865_v41  ;;  %335 = vmatpush.msra.mxu2 %v1887_v46 }
  0x4d   : > { %421 = vmatpush.msrb.mxu0 %v1691_v3  ;;  %441 = vmatpush.msrb.mxu1 %v1733_v13 }
  0x4e   : > { %535 = vmatpush.msrb.mxu3 %v1683_v1  ;;  %336 = vmatpush.msra.mxu2 %v1894_v47 }
  0x4f   : > { %422 = vmatpush.msrb.mxu0 %v1697_v5  ;;  %442 = vmatpush.msrb.mxu1 %v1747_v16 }
  0x50   : > { %536 = vmatpush.msrb.mxu3 %v1691_v3  ;;  %337 = vmatpush.msra.mxu2 %v1901_v48 }
  0x51   : > { %423 = vmatpush.msrb.mxu0 %v1706_v7  ;;  %443 = vmatpush.msrb.mxu1 %v1760_v19 }
  0x52   : > { %537 = vmatpush.msrb.mxu3 %v1697_v5  ;;  %338 = vmatmul.f32.vlgmr.msra.gmra.mxu2 %v1586_v44 }
  0x53   : > { %424 = vmatpush.msrb.mxu0 %v1715_v9  ;;  %444 = vmatpush.msrb.mxu1 %v1778_v22 }
  0x54   : > { %515 = vmatpush.msrb.mxu2 %v1680_v0  ;;  %538 = vmatpush.msrb.mxu3 %v1706_v7 }
  0x55   : > { %425 = vmatpush.msrb.mxu0 %v1724_v11  ;;  %445 = vmatpush.msrb.mxu1 %v1797_v25 }
  0x56   : > { %516 = vmatpush.msrb.mxu2 %v1686_v2  ;;  %539 = vmatpush.msrb.mxu3 %v1715_v9 }
  0x57   : > { %426 = vmatpush.msrb.mxu0 %v1740_v15  ;;  %446 = vmatpush.msrb.mxu1 %v1810_v28 }
  0x58   : > { %517 = vmatpush.msrb.mxu2 %v1694_v4  ;;  %540 = vmatpush.msrb.mxu3 %v1724_v11 }
  0x59   : > { %427 = vmatpush.msrb.mxu0 %v1753_v18  ;;  %447 = vmatpush.msrb.mxu1 %v1823_v31 }
  0x5a   : > { %518 = vmatpush.msrb.mxu2 %v1703_v6  ;;  %541 = vmatpush.msrb.mxu3 %v1740_v15 }
  0x5b   : > { %428 = vmatpush.msrb.mxu0 %v1771_v21  ;;  %448 = vmatpush.msrb.mxu1 %v1836_v34 }
  0x5c   : > { %519 = vmatpush.msrb.mxu2 %v1712_v8  ;;  %542 = vmatpush.msrb.mxu3 %v1753_v18 }
  0x5d   : > { %429 = vmatpush.msrb.mxu0 %v1790_v24  ;;  %449 = vmatpush.msrb.mxu1 %v1849_v37 }
  0x5e   : > { %520 = vmatpush.msrb.mxu2 %v1721_v10  ;;  %543 = vmatpush.msrb.mxu3 %v1771_v21 }
  0x5f   : > { %430 = vmatpush.msrb.mxu0 %v1803_v27  ;;  %450 = vmatpush.msrb.mxu1 %v1862_v40 }
  0x60   : > { %521 = vmatpush.msrb.mxu2 %v1737_v14  ;;  %544 = vmatpush.msrb.mxu3 %v1790_v24 }
  0x61   : > { %431 = vmatpush.msrb.mxu0 %v1816_v30  ;;  %451 = vmatpush.msrb.mxu1 %v1876_v43 }
  0x62   : > { %522 = vmatpush.msrb.mxu2 %v1750_v17  ;;  %545 = vmatpush.msrb.mxu3 %v1803_v27 }
  0x63   : > { %432 = vmatpush.msrb.mxu0 %v1829_v33  ;;  %452 = vmatpush.msrb.mxu1 %v1882_v45 }
  0x64   : > { %523 = vmatpush.msrb.mxu2 %v1768_v20  ;;  %546 = vmatpush.msrb.mxu3 %v1816_v30 }
  0x65   : > { %433 = vmatpush.msrb.mxu0 %v1842_v36  ;;  %453 = vmatpush.msrb.mxu1 %v1887_v46 }
  0x66   : > { %524 = vmatpush.msrb.mxu2 %v1787_v23  ;;  %547 = vmatpush.msrb.mxu3 %v1829_v33 }
  0x67   : > { %434 = vmatpush.msrb.mxu0 %v1855_v39  ;;  %454 = vmatpush.msrb.mxu1 %v1894_v47 }
  0x68   : > { %525 = vmatpush.msrb.mxu2 %v1800_v26  ;;  %548 = vmatpush.msrb.mxu3 %v1842_v36 }
  0x69   : > { %435 = vmatpush.msrb.mxu0 %v1868_v42  ;;  %455 = vmatpush.msrb.mxu1 %v1901_v48 }
  0x6a   : > { %526 = vmatpush.msrb.mxu2 %v1813_v29  ;;  %549 = vmatpush.msrb.mxu3 %v1855_v39 }
  0x6b   : > { %555 = vmatpush.msra.mxu0 %v1727_v12  ;;  %630 = vmatpush.msra.mxu1 %v1680_v0 }
  0x6c   : > { %527 = vmatpush.msrb.mxu2 %v1826_v32  ;;  %550 = vmatpush.msrb.mxu3 %v1868_v42 }
  0x6d   : > { %556 = vmatpush.msra.mxu0 %v1733_v13  ;;  %631 = vmatpush.msra.mxu1 %v1686_v2 }
  0x6e   : > { %528 = vmatpush.msrb.mxu2 %v1839_v35 }
  0x6f   : > { %557 = vmatpush.msra.mxu0 %v1747_v16  ;;  %632 = vmatpush.msra.mxu1 %v1694_v4 }
  0x70   : > { %529 = vmatpush.msrb.mxu2 %v1852_v38 }
  0x71   : > { %558 = vmatpush.msra.mxu0 %v1760_v19  ;;  %633 = vmatpush.msra.mxu1 %v1703_v6 }
  0x72   : > { %530 = vmatpush.msrb.mxu2 %v1865_v41 }
  0x73   : > { %559 = vmatpush.msra.mxu0 %v1778_v22  ;;  %634 = vmatpush.msra.mxu1 %v1712_v8 }
  0x74   : > { %650 = vmatpush.msra.mxu2 %v1683_v1 }
  0x75   : > { %560 = vmatpush.msra.mxu0 %v1797_v25  ;;  %635 = vmatpush.msra.mxu1 %v1721_v10 }
  0x76   : > { %651 = vmatpush.msra.mxu2 %v1691_v3 }
  0x77   : > { %561 = vmatpush.msra.mxu0 %v1810_v28  ;;  %636 = vmatpush.msra.mxu1 %v1737_v14 }
  0x78   : > { %652 = vmatpush.msra.mxu2 %v1697_v5 }
  0x79   : > { %562 = vmatpush.msra.mxu0 %v1823_v31  ;;  %637 = vmatpush.msra.mxu1 %v1750_v17 }
  0x7a   : > { %653 = vmatpush.msra.mxu2 %v1706_v7 }
  0x7b   : > { %563 = vmatpush.msra.mxu0 %v1836_v34  ;;  %638 = vmatpush.msra.mxu1 %v1768_v20 }
  0x7c   : > { %654 = vmatpush.msra.mxu2 %v1715_v9 }
  0x7d   : > { %564 = vmatpush.msra.mxu0 %v1849_v37  ;;  %639 = vmatpush.msra.mxu1 %v1787_v23 }
  0x7e   : > { %655 = vmatpush.msra.mxu2 %v1724_v11 }
  0x7f   : > { %565 = vmatpush.msra.mxu0 %v1862_v40  ;;  %640 = vmatpush.msra.mxu1 %v1800_v26 }
  0x80   : > { %656 = vmatpush.msra.mxu2 %v1740_v15 }
  0x81   : > { %566 = vmatpush.msra.mxu0 %v1876_v43  ;;  %641 = vmatpush.msra.mxu1 %v1813_v29 }
  0x82   : > { %657 = vmatpush.msra.mxu2 %v1753_v18 }
  0x83   : > { %567 = vmatpush.msra.mxu0 %v1882_v45  ;;  %642 = vmatpush.msra.mxu1 %v1826_v32 }
  0x84   : > { %658 = vmatpush.msra.mxu2 %v1771_v21 }
  0x85   : > { %568 = vmatpush.msra.mxu0 %v1887_v46  ;;  %643 = vmatpush.msra.mxu1 %v1839_v35 }
  0x86   : > { %659 = vmatpush.msra.mxu2 %v1790_v24 }
  0x87   : > { %569 = vmatpush.msra.mxu0 %v1894_v47  ;;  %644 = vmatpush.msra.mxu1 %v1852_v38 }
  0x88   : > { %660 = vmatpush.msra.mxu2 %v1803_v27 }
  0x89   : > { %570 = vmatpush.msra.mxu0 %v1901_v48  ;;  %645 = vmatpush.msra.mxu1 %v1865_v41  ;;  %v281_v48 = vld [vmem:[%s2020_s7 + $0x10] sm:$0xff]  ;;  %s1341_s7 = smul.u32 24, %s1083_s5 }
  0x8a   : > { %661 = vmatpush.msra.mxu2 %v1816_v30 }
  0x8b   : > { %s2399_s8 = scalar_lea.vmem %s2017_s6, %s1341_s7 }
  0x8c   : > { %662 = vmatpush.msra.mxu2 %v1829_v33 }
  0x8e   : > { %663 = vmatpush.msra.mxu2 %v1842_v36 }
  0x90   : > { %664 = vmatpush.msra.mxu2 %v1855_v39 }
  0x92   : > { %665 = vmatpush.msra.mxu2 %v1868_v42  ;;  %v2025_v42 = vld [vmem:[%s1784_s27] ss:$0 sm:$0xff] }
  0xc7   : > { %v299_v51 = vpop.f32.mrf.mxu0  ;;  %v319_v52 = vpop.f32.mrf.mxu1 }
  0xc8   : > { %v342_v53 = vadd.f32 %v299_v51, %v279_v49  ;;  %v343_v54 = vadd.f32 %v319_v52, %v280_v50 }
  0xca   : > { %v1309_v55 = vmul.f32 -1.442695, %v342_v53  ;;  %v1310_v56 = vmul.f32 -1.442695, %v343_v54 }
  0xcc   : > { %1389 = vpow2.f32 %v1309_v55 }
  0xcd   : > { %1391 = vpow2.f32 %v1310_v56 }
  0xd2   : > { %v1390_v57 = vpop.eup %1389 }
  0xd3   : > { %v1392_v58 = vpop.eup %1391  ;;  %v350_v59 = vadd.f32 1.0, %v1390_v57 }
  0xd4   : > { %v351_v60 = vadd.f32 1.0, %v1392_v58 }
  0xd5   : > { %1393 = vrcp.f32 %v350_v59  ;;  %v339_v50 = vpop.f32.mrf.mxu2  ;;  %v363_v51 = vand.u32 2147483648, %v350_v59  ;;  %v361_v53 = vand.u32 2147483647, %v350_v59  ;;  %vm357_vm1 = vweird.f32 %v350_v59 }
  0xd6   : > { %1395 = vrcp.f32 %v351_v60  ;;  %v385_v56 = vadd.f32 %v2025_v42, %v339_v50  ;;  %vm372_vm4 = vweird.f32 %v351_v60  ;;  %v378_v38 = vand.u32 2147483648, %v351_v60 }
  0xd7   : > { %v364_v57 = vor.u32 1.1754944e-38, %v363_v51  ;;  %vm362_vm3 = vcmp.eq.f32.partialorder %v361_v53, 8.507059e+37  ;;  %v376_v47 = vand.u32 2147483647, %v351_v60 }
  0xd9   : > { %vm377_vm7 = vcmp.eq.f32.partialorder %v376_v47, 8.507059e+37  ;;  %v2455_v47 = vld [vmem:[#allocation8_spill] sm:$0xff] }
  0xdb   : > { %v1394_v61 = vpop.eup %1393 }
  0xdc   : > { %v1396_v62 = vpop.eup %1395  ;;  %v353_v63 = vmul.f32 %v1394_v61, %v350_v59  ;;  %vm358_vm0 = vweird.f32 %v1394_v61 }
  0xdd   : > { %v368_v44 = vmul.f32 %v1396_v62, %v351_v60  ;;  %vm359_vm2 = vmor %vm357_vm1, %vm358_vm0  ;;  %vm373_vm5 = vweird.f32 %v1396_v62  ;;  %v2457_v60 = vld [vmem:[#allocation9_spill] sm:$0xff] }
  0xde   : > { %v354_v41 = vsub.f32 1.0, %v353_v63  ;;  %vm374_vm6 = vmor %vm372_vm4, %vm373_vm5 }
  0xdf   : > { %v369_v49 = vsub.f32 1.0, %v368_v44 }
  0xe0   : > { %v355_v52 = vmul.f32 %v1394_v61, %v354_v41 }
  0xe1   : > { %v370_v54 = vmul.f32 %v1396_v62, %v369_v49  ;;  %v379_v49 = vor.u32 1.1754944e-38, %v378_v38  ;;  %v2453_v38 = vld [vmem:[#allocation11_spill] sm:$0xff] }
  0xe2   : > { %v356_v55 = vadd.f32 %v1394_v61, %v355_v52 }
  0xe3   : > { %v371_v63 = vadd.f32 %v1396_v62, %v370_v54  ;;  %v398_v54 = vld [vmem:[%s2085_s10 + $0x8] sm:$0xff] }
  0xe4   : > { %v360_v58 = vsel %vm359_vm2, %v1394_v61, %v356_v55 }
  0xe5   : > { %v365_v39 = vsel %vm362_vm3, %v364_v57, %v360_v58  ;;  %v375_v36 = vsel %vm374_vm6, %v1396_v62, %v371_v63  ;;  %v2458_v62 = vld [vmem:[#allocation10_spill] sm:$0xff]  ;;  %v397_v58 = vld [vmem:[%s2085_s10] sm:$0xff] }
  0xe6   : > { %v386_v44 = vmul.f32 %v385_v56, %v365_v39  ;;  %v380_v59 = vsel %vm377_vm7, %v379_v49, %v375_v36  ;;  %v2452_v36 = vld [vmem:[#allocation6_spill] sm:$0xff]  ;;  %v2454_v39 = vld [vmem:[#allocation7_spill] sm:$0xff] }
  0xe7   : > { %v389_v50 = vsub.f32 1.0, %v380_v59  ;;  %v391_v61 = vmul.f32 0.0, %v380_v59 }
  0xe8   : > { %v387_v41 = vadd.f32 %v386_v44, %v281_v48  ;;  %v2456_v48 = vld [vmem:[#allocation12_spill] sm:$0xff] }
  0xea   : > { %1397 = vtanh.f32 %v387_v41 }
  0xf0   : > { %v1398_v52 = vpop.eup %1397 }
  0xf1   : > { %v390_v51 = vmul.f32 %v1398_v52, %v389_v50 }
  0xf3   : > { %v2029_v53 = vadd.f32 %v391_v61, %v390_v51 }
  0xf5   : > { %416 = vmatmul.f32.vlgmr.msra.gmra.mxu3 %v2029_v53  ;;  %436 = vmatmul.f32.vlgmr.msrb.gmra.mxu0 %v2029_v53 }
  0xf6   : > { %456 = vmatmul.f32.vlgmr.msrb.gmra.mxu1 %v2029_v53  ;;  %670 = vmatpush.msra.mxu3 %v1727_v12 }
  0xf7   : > { %745 = vmatpush.msrb.mxu0 %v1680_v0  ;;  %765 = vmatpush.msrb.mxu1 %v1683_v1 }
  0xf8   : > { %671 = vmatpush.msra.mxu3 %v1733_v13 }
  0xf9   : > { %746 = vmatpush.msrb.mxu0 %v1686_v2  ;;  %766 = vmatpush.msrb.mxu1 %v1691_v3 }
  0xfa   : > { %672 = vmatpush.msra.mxu3 %v1747_v16 }
  0xfb   : > { %747 = vmatpush.msrb.mxu0 %v1694_v4  ;;  %767 = vmatpush.msrb.mxu1 %v1697_v5 }
  0xfc   : > { %673 = vmatpush.msra.mxu3 %v1760_v19 }
  0xfd   : > { %748 = vmatpush.msrb.mxu0 %v1703_v6  ;;  %768 = vmatpush.msrb.mxu1 %v1706_v7 }
  0xfe   : > { %674 = vmatpush.msra.mxu3 %v1778_v22 }
  0xff   : > { %749 = vmatpush.msrb.mxu0 %v1712_v8  ;;  %769 = vmatpush.msrb.mxu1 %v1715_v9 }
 0x100   : > { %675 = vmatpush.msra.mxu3 %v1797_v25 }
 0x101   : > { %750 = vmatpush.msrb.mxu0 %v1721_v10  ;;  %770 = vmatpush.msrb.mxu1 %v1724_v11 }
 0x102   : > { %676 = vmatpush.msra.mxu3 %v1810_v28 }
 0x103   : > { %751 = vmatpush.msrb.mxu0 %v1737_v14  ;;  %771 = vmatpush.msrb.mxu1 %v1740_v15 }
 0x104   : > { %677 = vmatpush.msra.mxu3 %v1823_v31 }
 0x105   : > { %752 = vmatpush.msrb.mxu0 %v1750_v17  ;;  %772 = vmatpush.msrb.mxu1 %v1753_v18 }
 0x106   : > { %678 = vmatpush.msra.mxu3 %v1836_v34 }
 0x107   : > { %753 = vmatpush.msrb.mxu0 %v1768_v20  ;;  %773 = vmatpush.msrb.mxu1 %v1771_v21 }
 0x108   : > { %679 = vmatpush.msra.mxu3 %v1849_v37 }
 0x109   : > { %754 = vmatpush.msrb.mxu0 %v1787_v23  ;;  %774 = vmatpush.msrb.mxu1 %v1790_v24 }
 0x10a   : > { %680 = vmatpush.msra.mxu3 %v1862_v40 }
 0x10b   : > { %755 = vmatpush.msrb.mxu0 %v1800_v26  ;;  %775 = vmatpush.msrb.mxu1 %v1803_v27 }
 0x10c   : > { %681 = vmatpush.msra.mxu3 %v1876_v43 }
 0x10d   : > { %756 = vmatpush.msrb.mxu0 %v1813_v29  ;;  %776 = vmatpush.msrb.mxu1 %v1816_v30 }
 0x10e   : > { %682 = vmatpush.msra.mxu3 %v1882_v45 }
 0x10f   : > { %757 = vmatpush.msrb.mxu0 %v1826_v32  ;;  %777 = vmatpush.msrb.mxu1 %v1829_v33 }
 0x110   : > { %683 = vmatpush.msra.mxu3 %v1887_v46 }
 0x111   : > { %758 = vmatpush.msrb.mxu0 %v1839_v35  ;;  %778 = vmatpush.msrb.mxu1 %v2452_v36 }
 0x112   : > { %684 = vmatpush.msra.mxu3 %v2453_v38 }
 0x113   : > { %759 = vmatpush.msrb.mxu0 %v2454_v39  ;;  %779 = vmatpush.msrb.mxu1 %v2455_v47  ;;  %v399_v47 = vld [vmem:[%s2085_s10 + $0x10] sm:$0xff]  ;;  %s224_s10 = scalar_lea.vmem %s2425_s3, %s1307_s16 }
 0x114   : > { %685 = vmatpush.msra.mxu3 %v2456_v48 }
 0x115   : > { %760 = vmatpush.msrb.mxu0 %v2457_v60  ;;  %780 = vmatpush.msrb.mxu1 %v2458_v62 }
 0x172   : > { %v437_v55 = vpop.f32.mrf.mxu0 }
 0x173   : > { %v461_v56 = vadd.f32 %v437_v55, %v398_v54 }
 0x175   : > { %v1313_v57 = vmul.f32 -1.442695, %v461_v56 }
 0x177   : > { %1399 = vpow2.f32 %v1313_v57 }
 0x178   : > { %v417_v63 = vpop.f32.mrf.mxu3 }
 0x179   : > { %v460_v44 = vadd.f32 %v417_v63, %v397_v58  ;;  %v457_v63 = vpop.f32.mrf.mxu1 }
 0x17b   : > { %v1312_v41 = vmul.f32 -1.442695, %v460_v44 }
 0x17d   : > { %v1400_v49 = vpop.eup %1399  ;;  %1401 = vpow2.f32 %v1312_v41 }
 0x17e   : > { %v469_v59 = vadd.f32 1.0, %v1400_v49  ;;  %v500_v49 = vadd.f32 %v2025_v42, %v457_v63 }
 0x180   : > { %1403 = vrcp.f32 %v469_v59  ;;  %vm490_vm13 = vweird.f32 %v469_v59 }
 0x183   : > { %v1402_v50 = vpop.eup %1401 }
 0x184   : > { %v468_v52 = vadd.f32 1.0, %v1402_v50 }
 0x186   : > { %1405 = vrcp.f32 %v468_v52  ;;  %v1404_v51 = vpop.eup %1403  ;;  %v481_v55 = vand.u32 2147483648, %v468_v52  ;;  %v479_v57 = vand.u32 2147483647, %v468_v52  ;;  %vm475_vm9 = vweird.f32 %v468_v52 }
 0x187   : > { %v486_v61 = vmul.f32 %v1404_v51, %v469_v59  ;;  %vm491_vm12 = vweird.f32 %v1404_v51 }
 0x188   : > { %v482_v41 = vor.u32 1.1754944e-38, %v481_v55  ;;  %vm480_vm11 = vcmp.eq.f32.partialorder %v479_v57, 8.507059e+37  ;;  %vm492_vm14 = vmor %vm490_vm13, %vm491_vm12 }
 0x189   : > { %v487_v48 = vsub.f32 1.0, %v486_v61  ;;  %v496_v61 = vand.u32 2147483648, %v469_v59 }
 0x18b   : > { %v488_v58 = vmul.f32 %v1404_v51, %v487_v48  ;;  %v497_v35 = vor.u32 1.1754944e-38, %v496_v61 }
 0x18c   : > { %v1406_v62 = vpop.eup %1405 }
 0x18d   : > { %v471_v60 = vmul.f32 %v1406_v62, %v468_v52  ;;  %vm476_vm8 = vweird.f32 %v1406_v62  ;;  %v489_v38 = vadd.f32 %v1404_v51, %v488_v58 }
 0x18e   : > { %vm477_vm10 = vmor %vm475_vm9, %vm476_vm8 }
 0x18f   : > { %v472_v54 = vsub.f32 1.0, %v471_v60  ;;  %v493_v48 = vsel %vm492_vm14, %v1404_v51, %v489_v38 }
 0x191   : > { %v473_v56 = vmul.f32 %v1406_v62, %v472_v54  ;;  %v494_v54 = vand.u32 2147483647, %v469_v59 }
 0x193   : > { %v474_v44 = vadd.f32 %v1406_v62, %v473_v56  ;;  %vm495_vm15 = vcmp.eq.f32.partialorder %v494_v54, 8.507059e+37 }
 0x194   : > { %v498_v52 = vsel %vm495_vm15, %v497_v35, %v493_v48  ;;  %v512_v35 = vld [vmem:[%s2148_s18] sm:$0xff] }
 0x195   : > { %v478_v50 = vsel %vm477_vm10, %v1406_v62, %v474_v44  ;;  %v504_v55 = vsub.f32 1.0, %v498_v52  ;;  %v506_v62 = vmul.f32 %v498_v52, %v2029_v53  ;;  %v513_v53 = vld [vmem:[%s2148_s18 + $0x8] sm:$0xff] }
 0x196   : > { %v483_v39 = vsel %vm480_vm11, %v482_v41, %v478_v50 }
 0x197   : > { %v501_v60 = vmul.f32 %v500_v49, %v483_v39 }
 0x199   : > { %v502_v36 = vadd.f32 %v501_v60, %v399_v47 }
 0x19b   : > { %1407 = vtanh.f32 %v502_v36 }
 0x1a1   : > { %v1408_v56 = vpop.eup %1407 }
 0x1a2   : > { %v505_v63 = vmul.f32 %v1408_v56, %v504_v55 }
 0x1a4   : > { %v2092_v57 = vadd.f32 %v506_v62, %v505_v63 }
 0x1a6   : > { %531 = vmatmul.f32.vlgmr.msrb.gmra.mxu2 %v2092_v57  ;;  %551 = vmatmul.f32.vlgmr.msrb.gmra.mxu3 %v2092_v57 }
 0x1a7   : > { %571 = vmatmul.f32.vlgmr.msra.gmra.mxu0 %v2092_v57  ;;  %785 = vmatpush.msrb.mxu2 %v1727_v12 }
 0x1a8   : > { %860 = vmatpush.msrb.mxu3 %v1680_v0  ;;  %880 = vmatpush.msra.mxu0 %v1683_v1  ;;  %v2459_v0 = vld [vmem:[#allocation5_spill] sm:$0xff]  ;;  %v2460_v1 = vld [vmem:[#allocation6_spill] sm:$0xff] }
 0x1a9   : > { %786 = vmatpush.msrb.mxu2 %v1733_v13 }
 0x1aa   : > { %861 = vmatpush.msrb.mxu3 %v1686_v2  ;;  %881 = vmatpush.msra.mxu0 %v1691_v3  ;;  %v2461_v2 = vld [vmem:[#allocation11_spill] sm:$0xff] }
 0x1ab   : > { %787 = vmatpush.msrb.mxu2 %v1747_v16  ;;  %v2462_v3 = vld [vmem:[#allocation7_spill] sm:$0xff] }
 0x1ac   : > { %862 = vmatpush.msrb.mxu3 %v1694_v4  ;;  %882 = vmatpush.msra.mxu0 %v1697_v5  ;;  %v2463_v4 = vld [vmem:[#allocation8_spill] sm:$0xff] }
 0x1ad   : > { %788 = vmatpush.msrb.mxu2 %v1760_v19  ;;  %v2464_v5 = vld [vmem:[#allocation12_spill] sm:$0xff] }
 0x1ae   : > { %863 = vmatpush.msrb.mxu3 %v1703_v6  ;;  %883 = vmatpush.msra.mxu0 %v1706_v7  ;;  %v2465_v6 = vld [vmem:[#allocation9_spill] sm:$0xff]  ;;  %v2466_v7 = vld [vmem:[#allocation10_spill] sm:$0xff] }
 0x1af   : > { %789 = vmatpush.msrb.mxu2 %v1778_v22 }
 0x1b0   : > { %864 = vmatpush.msrb.mxu3 %v1712_v8  ;;  %884 = vmatpush.msra.mxu0 %v1715_v9 }
 0x1b1   : > { %790 = vmatpush.msrb.mxu2 %v1797_v25 }
 0x1b2   : > { %865 = vmatpush.msrb.mxu3 %v1721_v10  ;;  %885 = vmatpush.msra.mxu0 %v1724_v11 }
 0x1b3   : > { %791 = vmatpush.msrb.mxu2 %v1810_v28 }
 0x1b4   : > { %866 = vmatpush.msrb.mxu3 %v1737_v14  ;;  %886 = vmatpush.msra.mxu0 %v1740_v15 }
 0x1b5   : > { %792 = vmatpush.msrb.mxu2 %v1823_v31 }
 0x1b6   : > { %867 = vmatpush.msrb.mxu3 %v1750_v17  ;;  %887 = vmatpush.msra.mxu0 %v1753_v18 }
 0x1b7   : > { %793 = vmatpush.msrb.mxu2 %v1836_v34 }
 0x1b8   : > { %868 = vmatpush.msrb.mxu3 %v1768_v20  ;;  %888 = vmatpush.msra.mxu0 %v1771_v21 }
 0x1b9   : > { %794 = vmatpush.msrb.mxu2 %v1849_v37 }
 0x1ba   : > { %869 = vmatpush.msrb.mxu3 %v1787_v23  ;;  %889 = vmatpush.msra.mxu0 %v1790_v24 }
 0x1bb   : > { %795 = vmatpush.msrb.mxu2 %v1862_v40 }
 0x1bc   : > { %870 = vmatpush.msrb.mxu3 %v1800_v26  ;;  %890 = vmatpush.msra.mxu0 %v1803_v27 }
 0x1bd   : > { %796 = vmatpush.msrb.mxu2 %v1876_v43 }
 0x1be   : > { %871 = vmatpush.msrb.mxu3 %v1813_v29  ;;  %891 = vmatpush.msra.mxu0 %v1816_v30 }
 0x1bf   : > { %797 = vmatpush.msrb.mxu2 %v1882_v45 }
 0x1c0   : > { %872 = vmatpush.msrb.mxu3 %v1826_v32  ;;  %892 = vmatpush.msra.mxu0 %v1829_v33 }
 0x1c1   : > { %798 = vmatpush.msrb.mxu2 %v1887_v46 }
 0x1c2   : > { %873 = vmatpush.msrb.mxu3 %v2459_v0  ;;  %893 = vmatpush.msra.mxu0 %v2460_v1 }
 0x1c3   : > { %799 = vmatpush.msrb.mxu2 %v2461_v2 }
 0x1c4   : > { %874 = vmatpush.msrb.mxu3 %v2462_v3  ;;  %894 = vmatpush.msra.mxu0 %v2463_v4 }
 0x1c5   : > { %800 = vmatpush.msrb.mxu2 %v2464_v5 }
 0x1c6   : > { %875 = vmatpush.msrb.mxu3 %v2465_v6  ;;  %895 = vmatpush.msra.mxu0 %v2466_v7 }
 0x224   : > { %v572_v62 = vpop.f32.mrf.mxu0 }
 0x229   : > { %v532_v36 = vpop.f32.mrf.mxu2  ;;  %v552_v38 = vpop.f32.mrf.mxu3 }
 0x22a   : > { %v575_v39 = vadd.f32 %v532_v36, %v512_v35  ;;  %v576_v47 = vadd.f32 %v552_v38, %v513_v53  ;;  %v615_v38 = vadd.f32 %v2025_v42, %v572_v62 }
 0x22c   : > { %v1315_v59 = vmul.f32 -1.442695, %v575_v39  ;;  %v1316_v51 = vmul.f32 -1.442695, %v576_v47  ;;  %v514_v47 = vld [vmem:[%s2148_s18 + $0x10] sm:$0xff] }
 0x22e   : > { %1409 = vpow2.f32 %v1315_v59 }
 0x22f   : > { %1411 = vpow2.f32 %v1316_v51 }
 0x234   : > { %v1410_v58 = vpop.eup %1409 }
 0x235   : > { %v1412_v44 = vpop.eup %1411  ;;  %v583_v41 = vadd.f32 1.0, %v1410_v58 }
 0x236   : > { %v584_v49 = vadd.f32 1.0, %v1412_v44 }
 0x237   : > { %1413 = vrcp.f32 %v583_v41  ;;  %v596_v52 = vand.u32 2147483648, %v583_v41  ;;  %v594_v63 = vand.u32 2147483647, %v583_v41  ;;  %vm590_vm1 = vweird.f32 %v583_v41 }
 0x238   : > { %1415 = vrcp.f32 %v584_v49  ;;  %v611_v44 = vand.u32 2147483648, %v584_v49  ;;  %vm605_vm5 = vweird.f32 %v584_v49 }
 0x239   : > { %v597_v36 = vor.u32 1.1754944e-38, %v596_v52  ;;  %vm595_vm3 = vcmp.eq.f32.partialorder %v594_v63, 8.507059e+37 }
 0x23d   : > { %v1414_v50 = vpop.eup %1413 }
 0x23e   : > { %v1416_v61 = vpop.eup %1415  ;;  %v586_v60 = vmul.f32 %v1414_v50, %v583_v41  ;;  %vm591_vm0 = vweird.f32 %v1414_v50  ;;  %v612_v41 = vor.u32 1.1754944e-38, %v611_v44  ;;  %v2260_v44 = vld [vmem:[%s1673_s26 + $0x148] sm:$0xff] }
 0x23f   : > { %v601_v54 = vmul.f32 %v1416_v61, %v584_v49  ;;  %vm592_vm2 = vmor %vm590_vm1, %vm591_vm0  ;;  %vm606_vm4 = vweird.f32 %v1416_v61 }
 0x240   : > { %v587_v48 = vsub.f32 1.0, %v586_v60  ;;  %v609_v60 = vand.u32 2147483647, %v584_v49  ;;  %vm607_vm6 = vmor %vm605_vm5, %vm606_vm4  ;;  %v2162_v49 = vld [vmem:[%s1673_s26 + $0x168] sm:$0xff] }
 0x241   : > { %v602_v55 = vsub.f32 1.0, %v601_v54 }
 0x242   : > { %v588_v56 = vmul.f32 %v1414_v50, %v587_v48  ;;  %vm610_vm7 = vcmp.eq.f32.partialorder %v609_v60, 8.507059e+37  ;;  %v2266_v60 = vld [vmem:[%s1673_s26 + $0x130] sm:$0xff] }
 0x243   : > { %v603_v35 = vmul.f32 %v1416_v61, %v602_v55 }
 0x244   : > { %v589_v53 = vadd.f32 %v1414_v50, %v588_v56 }
 0x245   : > { %v604_v51 = vadd.f32 %v1416_v61, %v603_v35  ;;  %v2175_v35 = vld [vmem:[%s1673_s26 + $0x158] sm:$0xff] }
 0x246   : > { %v593_v39 = vsel %vm592_vm2, %v1414_v50, %v589_v53  ;;  %v2184_v53 = vld [vmem:[%s1673_s26 + $0x140] sm:$0xff] }
 0x247   : > { %v598_v59 = vsel %vm595_vm3, %v597_v36, %v593_v39  ;;  %v608_v48 = vsel %vm607_vm6, %v1416_v61, %v604_v51  ;;  %v2166_v61 = vld [vmem:[%s1673_s26 + $0x170] sm:$0xff]  ;;  %v2193_v36 = vld [vmem:[%s1673_s26 + $0x128] sm:$0xff]  ;;  %v2248_v51 = vld [vmem:[%s1673_s26 + $0x178] sm:$0xff] }
 0x248   : > { %v616_v58 = vmul.f32 %v615_v38, %v598_v59  ;;  %v613_v52 = vsel %vm610_vm7, %v612_v41, %v608_v48  ;;  %v1482_v48 = vld [vmem:[%s1673_s26 + $0x108] sm:$0xff]  ;;  %v1483_v41 = vld [vmem:[%s1673_s26 + $0x110] sm:$0xff] }
 0x249   : > { %v619_v50 = vsub.f32 1.0, %v613_v52  ;;  %v621_v63 = vmul.f32 %v613_v52, %v2092_v57  ;;  %v2171_v57 = vld [vmem:[%s1673_s26 + $0x150] sm:$0xff]  ;;  %v2278_v52 = vld [vmem:[%s1673_s26 + $0x100] sm:$0xff] }
 0x24a   : > { %v617_v54 = vadd.f32 %v616_v58, %v514_v47  ;;  %v2254_v58 = vld [vmem:[%s1673_s26 + $0x160] sm:$0xff] }
 0x24c   : > { %1417 = vtanh.f32 %v617_v54  ;;  %v2272_v54 = vld [vmem:[%s1673_s26 + $0x118] sm:$0xff] }
 0x252   : > { %v1418_v55 = vpop.eup %1417 }
 0x253   : > { %v620_v56 = vmul.f32 %v1418_v55, %v619_v50  ;;  %v1485_v50 = vld [vmem:[%s1673_s26 + $0xf0] sm:$0xff]  ;;  %v1486_v55 = vld [vmem:[%s1673_s26 + $0xf8] sm:$0xff] }
 0x255   : > { %v2155_v62 = vadd.f32 %v621_v63, %v620_v56  ;;  %v2284_v56 = vld [vmem:[%s1673_s26 + $0xe8] sm:$0xff]  ;;  %v1488_v63 = vld [vmem:[%s1673_s26 + $0xd8] sm:$0xff] }
 0x257   : > { %646 = vmatmul.f32.vlgmr.msra.gmra.mxu1 %v2155_v62  ;;  %666 = vmatmul.f32.vlgmr.msra.gmra.mxu2 %v2155_v62 }
 0x258   : > { %686 = vmatmul.f32.vlgmr.msra.gmra.mxu3 %v2155_v62  ;;  %900 = vmatpush.msra.mxu1 %v1727_v12  ;;  %v2180_v12 = vld [vmem:[%s1673_s26 + $0x138] sm:$0xff] }
 0x259   : > { %975 = vmatpush.msra.mxu2 %v2162_v49  ;;  %995 = vmatpush.msra.mxu3 %v2166_v61 }
 0x25a   : > { %901 = vmatpush.msra.mxu1 %v1733_v13  ;;  %v2189_v13 = vld [vmem:[%s1673_s26 + $0x120] sm:$0xff] }
 0x25b   : > { %976 = vmatpush.msra.mxu2 %v2171_v57  ;;  %996 = vmatpush.msra.mxu3 %v2175_v35 }
 0x25c   : > { %902 = vmatpush.msra.mxu1 %v1747_v16 }
 0x25d   : > { %977 = vmatpush.msra.mxu2 %v2180_v12  ;;  %997 = vmatpush.msra.mxu3 %v2184_v53 }
 0x25e   : > { %903 = vmatpush.msra.mxu1 %v1760_v19 }
 0x25f   : > { %978 = vmatpush.msra.mxu2 %v2189_v13  ;;  %998 = vmatpush.msra.mxu3 %v2193_v36 }
 0x260   : > { %904 = vmatpush.msra.mxu1 %v1778_v22 }
 0x261   : > { %979 = vmatpush.msra.mxu2 %v1712_v8  ;;  %999 = vmatpush.msra.mxu3 %v1715_v9  ;;  %v627_v8 = vld [vmem:[%s2235_s23] sm:$0xff] }
 0x262   : > { %905 = vmatpush.msra.mxu1 %v1797_v25 }
 0x263   : > { %980 = vmatpush.msra.mxu2 %v1721_v10  ;;  %1000 = vmatpush.msra.mxu3 %v1724_v11 }
 0x264   : > { %906 = vmatpush.msra.mxu1 %v1810_v28 }
 0x265   : > { %981 = vmatpush.msra.mxu2 %v1737_v14  ;;  %1001 = vmatpush.msra.mxu3 %v1740_v15  ;;  %v628_v14 = vld [vmem:[%s2235_s23 + $0x8] sm:$0xff] }
 0x266   : > { %907 = vmatpush.msra.mxu1 %v1823_v31 }
 0x267   : > { %982 = vmatpush.msra.mxu2 %v1750_v17  ;;  %1002 = vmatpush.msra.mxu3 %v1753_v18 }
 0x268   : > { %908 = vmatpush.msra.mxu1 %v1836_v34 }
 0x269   : > { %983 = vmatpush.msra.mxu2 %v1768_v20  ;;  %1003 = vmatpush.msra.mxu3 %v1771_v21 }
 0x26a   : > { %909 = vmatpush.msra.mxu1 %v1849_v37 }
 0x26b   : > { %984 = vmatpush.msra.mxu2 %v1787_v23  ;;  %1004 = vmatpush.msra.mxu3 %v1790_v24 }
 0x26c   : > { %910 = vmatpush.msra.mxu1 %v1862_v40  ;;  %v629_v40 = vld [vmem:[%s2235_s23 + $0x10] sm:$0xff] }
 0x26d   : > { %985 = vmatpush.msra.mxu2 %v1800_v26  ;;  %1005 = vmatpush.msra.mxu3 %v1803_v27 }
 0x26e   : > { %911 = vmatpush.msra.mxu1 %v1876_v43 }
 0x26f   : > { %986 = vmatpush.msra.mxu2 %v1813_v29  ;;  %1006 = vmatpush.msra.mxu3 %v1816_v30 }
 0x270   : > { %912 = vmatpush.msra.mxu1 %v1882_v45 }
 0x271   : > { %987 = vmatpush.msra.mxu2 %v1826_v32  ;;  %1007 = vmatpush.msra.mxu3 %v1829_v33 }
 0x272   : > { %913 = vmatpush.msra.mxu1 %v1887_v46 }
 0x273   : > { %988 = vmatpush.msra.mxu2 %v2459_v0  ;;  %1008 = vmatpush.msra.mxu3 %v2460_v1 }
 0x274   : > { %914 = vmatpush.msra.mxu1 %v2461_v2 }
 0x275   : > { %989 = vmatpush.msra.mxu2 %v2462_v3  ;;  %1009 = vmatpush.msra.mxu3 %v2463_v4 }
 0x276   : > { %915 = vmatpush.msra.mxu1 %v2464_v5 }
 0x277   : > { %990 = vmatpush.msra.mxu2 %v2465_v6  ;;  %1010 = vmatpush.msra.mxu3 %v2466_v7 }
 0x2d4   : > { %v647_v9 = vpop.f32.mrf.mxu1 }
 0x2d5   : > { %v690_v10 = vadd.f32 %v647_v9, %v627_v8  ;;  %v1498_v8 = vld [vmem:[%s1673_s26 + $0x98] sm:$0xff]  ;;  %v2308_v9 = vld [vmem:[%s1673_s26 + $0x88] sm:$0xff] }
 0x2d7   : > { %v1318_v11 = vmul.f32 -1.442695, %v690_v10  ;;  %v1500_v10 = vld [vmem:[%s1673_s26 + $0x78] sm:$0xff] }
 0x2d9   : > { %1419 = vpow2.f32 %v1318_v11  ;;  %v1501_v11 = vld [vmem:[%s1673_s26 + $0x80] sm:$0xff] }
 0x2da   : > { %v667_v15 = vpop.f32.mrf.mxu2 }
 0x2db   : > { %v691_v16 = vadd.f32 %v667_v15, %v628_v14  ;;  %v687_v29 = vpop.f32.mrf.mxu3  ;;  %v2314_v14 = vld [vmem:[%s1673_s26 + $0x70] sm:$0xff]  ;;  %v1503_v15 = vld [vmem:[%s1673_s26 + $0x60] sm:$0xff] }
 0x2dc   : > { %v730_v37 = vadd.f32 %v2025_v42, %v687_v29  ;;  %v742_v29 = vld [vmem:[%s2346_s25] sm:$0xff] }
 0x2dd   : > { %v1319_v17 = vmul.f32 -1.442695, %v691_v16  ;;  %v1504_v16 = vld [vmem:[%s1673_s26 + $0x68] sm:$0xff] }
 0x2df   : > { %v1420_v18 = vpop.eup %1419  ;;  %1421 = vpow2.f32 %v1319_v17  ;;  %v2320_v17 = vld [vmem:[%s1673_s26 + $0x58] sm:$0xff] }
 0x2e0   : > { %v698_v19 = vadd.f32 1.0, %v1420_v18  ;;  %v1506_v18 = vld [vmem:[%s1673_s26 + $0x48] sm:$0xff] }
 0x2e2   : > { %1423 = vrcp.f32 %v698_v19  ;;  %v711_v25 = vand.u32 2147483648, %v698_v19  ;;  %v709_v27 = vand.u32 2147483647, %v698_v19  ;;  %vm705_vm9 = vweird.f32 %v698_v19 }
 0x2e4   : > { %v712_v32 = vor.u32 1.1754944e-38, %v711_v25  ;;  %vm710_vm11 = vcmp.eq.f32.partialorder %v709_v27, 8.507059e+37  ;;  %v1513_v25 = vld [vmem:[%s1673_s26 + $0x20] sm:$0xff] }
 0x2e5   : > { %v1422_v20 = vpop.eup %1421  ;;  %v1515_v27 = vld [vmem:[%s1673_s26] sm:$0xff] }
 0x2e6   : > { %v699_v21 = vadd.f32 1.0, %v1422_v20  ;;  %v2326_v20 = vld [vmem:[%s1673_s26 + $0x40] sm:$0xff] }
 0x2e8   : > { %v1424_v22 = vpop.eup %1423  ;;  %1425 = vrcp.f32 %v699_v21  ;;  %v726_v0 = vand.u32 2147483648, %v699_v21  ;;  %v724_v1 = vand.u32 2147483647, %v699_v21  ;;  %vm720_vm13 = vweird.f32 %v699_v21 }
 0x2e9   : > { %v701_v23 = vmul.f32 %v1424_v22, %v698_v19  ;;  %vm706_vm8 = vweird.f32 %v1424_v22  ;;  %v1507_v19 = vld [vmem:[%s1673_s26 + $0x50] sm:$0xff] }
 0x2ea   : > { %vm707_vm10 = vmor %vm705_vm9, %vm706_vm8  ;;  %v727_v5 = vor.u32 1.1754944e-38, %v726_v0  ;;  %vm725_vm15 = vcmp.eq.f32.partialorder %v724_v1, 8.507059e+37 }
 0x2eb   : > { %v702_v24 = vsub.f32 1.0, %v701_v23  ;;  %v2332_v23 = vld [vmem:[%s1673_s26 + $0x28] sm:$0xff] }
 0x2ed   : > { %v703_v26 = vmul.f32 %v1424_v22, %v702_v24  ;;  %v1512_v24 = vld [vmem:[%s1673_s26 + $0x18] sm:$0xff] }
 0x2ee   : > { %v1426_v28 = vpop.eup %1425 }
 0x2ef   : > { %v716_v30 = vmul.f32 %v1426_v28, %v699_v21  ;;  %v704_v31 = vadd.f32 %v1424_v22, %v703_v26  ;;  %vm721_vm12 = vweird.f32 %v1426_v28  ;;  %v1509_v21 = vld [vmem:[%s1673_s26 + $0x30] sm:$0xff] }
 0x2f0   : > { %vm722_vm14 = vmor %vm720_vm13, %vm721_vm12  ;;  %v2338_v26 = vld [vmem:[%s1673_s26 + $0x10] sm:$0xff] }
 0x2f1   : > { %v717_v33 = vsub.f32 1.0, %v716_v30  ;;  %v708_v34 = vsel %vm707_vm10, %v1424_v22, %v704_v31  ;;  %v1510_v22 = vld [vmem:[%s1673_s26 + $0x38] sm:$0xff]  ;;  %v743_v30 = vld [vmem:[%s2346_s25 + $0x8] sm:$0xff] }
 0x2f2   : > { %v713_v43 = vsel %vm710_vm11, %v712_v32, %v708_v34 }
 0x2f3   : > { %v718_v45 = vmul.f32 %v1426_v28, %v717_v33  ;;  %v731_v46 = vmul.f32 %v730_v37, %v713_v43 }
 0x2f5   : > { %v732_v2 = vadd.f32 %v731_v46, %v629_v40  ;;  %v719_v3 = vadd.f32 %v1426_v28, %v718_v45 }
 0x2f7   : > { %1427 = vtanh.f32 %v732_v2  ;;  %v723_v4 = vsel %vm722_vm14, %v1426_v28, %v719_v3  ;;  %v1516_v28 = vld [vmem:[%s1673_s26 + $0x8] sm:$0xff] }
 0x2f8   : > { %v728_v6 = vsel %vm725_vm15, %v727_v5, %v723_v4 }
 0x2f9   : > { %v734_v7 = vsub.f32 1.0, %v728_v6  ;;  %v736_v47 = vmul.f32 %v728_v6, %v2155_v62  ;;  %v1489_v62 = vld [vmem:[%s1673_s26 + $0xe0] sm:$0xff] }
 0x2fd   : > { %v1428_v38 = vpop.eup %1427 }
 0x2fe   : > { %v735_v39 = vmul.f32 %v1428_v38, %v734_v7 }
 0x300   : > { %v2242_v59 = vadd.f32 %v736_v47, %v735_v39 }
 0x302   : > { %761 = vmatmul.f32.vlgmr.msrb.gmra.mxu0 %v2242_v59  ;;  %781 = vmatmul.f32.vlgmr.msrb.gmra.mxu1 %v2242_v59 }
 0x303   : > { %801 = vmatmul.f32.vlgmr.msrb.gmra.mxu2 %v2242_v59  ;;  %1015 = vmatpush.msrb.mxu0 %v2248_v51 }
 0x304   : > { %1090 = vmatpush.msrb.mxu1 %v2162_v49  ;;  %1110 = vmatpush.msrb.mxu2 %v2166_v61  ;;  %v2290_v49 = vld [vmem:[%s1673_s26 + $0xd0] sm:$0xff]  ;;  %v1491_v61 = vld [vmem:[%s1673_s26 + $0xc0] sm:$0xff] }
 0x305   : > { %1016 = vmatpush.msrb.mxu0 %v2254_v58 }
 0x306   : > { %1091 = vmatpush.msrb.mxu1 %v2171_v57  ;;  %1111 = vmatpush.msrb.mxu2 %v2175_v35  ;;  %v1492_v57 = vld [vmem:[%s1673_s26 + $0xc8] sm:$0xff]  ;;  %v2296_v35 = vld [vmem:[%s1673_s26 + $0xb8] sm:$0xff] }
 0x307   : > { %1017 = vmatpush.msrb.mxu0 %v2260_v44 }
 0x308   : > { %1092 = vmatpush.msrb.mxu1 %v2180_v12  ;;  %1112 = vmatpush.msrb.mxu2 %v2184_v53  ;;  %v1494_v12 = vld [vmem:[%s1673_s26 + $0xa8] sm:$0xff]  ;;  %v1495_v53 = vld [vmem:[%s1673_s26 + $0xb0] sm:$0xff] }
 0x309   : > { %1018 = vmatpush.msrb.mxu0 %v2266_v60 }
 0x30a   : > { %1093 = vmatpush.msrb.mxu1 %v2189_v13  ;;  %1113 = vmatpush.msrb.mxu2 %v2193_v36  ;;  %v2302_v13 = vld [vmem:[%s1673_s26 + $0xa0] sm:$0xff]  ;;  %v1497_v36 = vld [vmem:[%s1673_s26 + $0x90] sm:$0xff]  ;;  %s853_s26 = scalar_select %p63_p5, 5, 2 }
 0x30b   : > { %1019 = vmatpush.msrb.mxu0 %v2272_v54 }
 0x30c   : > { %1094 = vmatpush.msrb.mxu1 %v1482_v48  ;;  %1114 = vmatpush.msrb.mxu2 %v1483_v41  ;;  %s1339_s28 = smul.u32 24, %s853_s26 }
 0x30d   : > { %1020 = vmatpush.msrb.mxu0 %v2278_v52 }
 0x30e   : > { %1095 = vmatpush.msrb.mxu1 %v1485_v50  ;;  %1115 = vmatpush.msrb.mxu2 %v1486_v55  ;;  %s2377_s29 = scalar_lea.vmem %s2017_s6, %s1339_s28 }
 0x30f   : > { %1021 = vmatpush.msrb.mxu0 %v2284_v56 }
 0x310   : > { %1096 = vmatpush.msrb.mxu1 %v1488_v63  ;;  %1116 = vmatpush.msrb.mxu2 %v1489_v62  ;;  %v744_v62 = vld [vmem:[%s2346_s25 + $0x10] sm:$0xff] }
 0x311   : > { %1022 = vmatpush.msrb.mxu0 %v2290_v49 }
 0x312   : > { %1097 = vmatpush.msrb.mxu1 %v1491_v61  ;;  %1117 = vmatpush.msrb.mxu2 %v1492_v57 }
 0x313   : > { %1023 = vmatpush.msrb.mxu0 %v2296_v35 }
 0x314   : > { %1098 = vmatpush.msrb.mxu1 %v1494_v12  ;;  %1118 = vmatpush.msrb.mxu2 %v1495_v53 }
 0x315   : > { %1024 = vmatpush.msrb.mxu0 %v2302_v13 }
 0x316   : > { %1099 = vmatpush.msrb.mxu1 %v1497_v36  ;;  %1119 = vmatpush.msrb.mxu2 %v1498_v8 }
 0x317   : > { %1025 = vmatpush.msrb.mxu0 %v2308_v9 }
 0x318   : > { %1100 = vmatpush.msrb.mxu1 %v1500_v10  ;;  %1120 = vmatpush.msrb.mxu2 %v1501_v11 }
 0x319   : > { %1026 = vmatpush.msrb.mxu0 %v2314_v14 }
 0x31a   : > { %1101 = vmatpush.msrb.mxu1 %v1503_v15  ;;  %1121 = vmatpush.msrb.mxu2 %v1504_v16 }
 0x31b   : > { %1027 = vmatpush.msrb.mxu0 %v2320_v17 }
 0x31c   : > { %1102 = vmatpush.msrb.mxu1 %v1506_v18  ;;  %1122 = vmatpush.msrb.mxu2 %v1507_v19 }
 0x31d   : > { %1028 = vmatpush.msrb.mxu0 %v2326_v20 }
 0x31e   : > { %1103 = vmatpush.msrb.mxu1 %v1509_v21  ;;  %1123 = vmatpush.msrb.mxu2 %v1510_v22 }
 0x31f   : > { %1029 = vmatpush.msrb.mxu0 %v2332_v23 }
 0x320   : > { %1104 = vmatpush.msrb.mxu1 %v1512_v24  ;;  %1124 = vmatpush.msrb.mxu2 %v1513_v25 }
 0x321   : > { %1030 = vmatpush.msrb.mxu0 %v2338_v26 }
 0x322   : > { %1105 = vmatpush.msrb.mxu1 %v1515_v27  ;;  %1125 = vmatpush.msrb.mxu2 %v1516_v28 }
 0x37f   : > { %v762_v31 = vpop.f32.mrf.mxu0  ;;  %v782_v32 = vpop.f32.mrf.mxu1 }
 0x380   : > { %v805_v33 = vadd.f32 %v762_v31, %v742_v29  ;;  %v806_v34 = vadd.f32 %v782_v32, %v743_v30  ;;  %v2382_v32 = vld [vmem:[%s1784_s27] ss:$0 sm:$0xff]  ;;  %s968_s27 = scalar_select %p63_p5, 6, 1 }
 0x382   : > { %v1321_v37 = vmul.f32 -1.442695, %v805_v33  ;;  %v1322_v40 = vmul.f32 -1.442695, %v806_v34  ;;  %s1340_s30 = smul.u32 24, %s968_s27 }
 0x384   : > { %1429 = vpow2.f32 %v1321_v37  ;;  %v859_v37 = vld [vmem:[%s2377_s29 + $0x10] sm:$0xff]  ;;  %s2390_s4 = scalar_lea.vmem %s2017_s6, %s1340_s30 }
 0x385   : > { %1431 = vpow2.f32 %v1322_v40 }
 0x386   : > { %v802_v48 = vpop.f32.mrf.mxu2 }
 0x387   : > { %v845_v63 = vadd.f32 %v2025_v42, %v802_v48  ;;  %v973_v48 = vld [vmem:[%s2390_s4 + $0x8] sm:$0xff] }
 0x38a   : > { %v1430_v43 = vpop.eup %1429 }
 0x38b   : > { %v1432_v45 = vpop.eup %1431  ;;  %v813_v46 = vadd.f32 1.0, %v1430_v43 }
 0x38c   : > { %v814_v0 = vadd.f32 1.0, %v1432_v45 }
 0x38d   : > { %1433 = vrcp.f32 %v813_v46  ;;  %v826_v7 = vand.u32 2147483648, %v813_v46  ;;  %v824_v39 = vand.u32 2147483647, %v813_v46  ;;  %vm820_vm1 = vweird.f32 %v813_v46 }
 0x38e   : > { %1435 = vrcp.f32 %v814_v0  ;;  %v841_v53 = vand.u32 2147483648, %v814_v0  ;;  %vm835_vm5 = vweird.f32 %v814_v0  ;;  %v839_v36 = vand.u32 2147483647, %v814_v0 }
 0x38f   : > { %v827_v50 = vor.u32 1.1754944e-38, %v826_v7  ;;  %vm825_vm3 = vcmp.eq.f32.partialorder %v824_v39, 8.507059e+37 }
 0x390   : > { %v842_v11 = vor.u32 1.1754944e-38, %v841_v53  ;;  %vm840_vm7 = vcmp.eq.f32.partialorder %v839_v36, 8.507059e+37 }
 0x393   : > { %v1434_v1 = vpop.eup %1433 }
 0x394   : > { %v1436_v2 = vpop.eup %1435  ;;  %v816_v3 = vmul.f32 %v1434_v1, %v813_v46  ;;  %vm821_vm0 = vweird.f32 %v1434_v1 }
 0x395   : > { %v831_v4 = vmul.f32 %v1436_v2, %v814_v0  ;;  %vm822_vm2 = vmor %vm820_vm1, %vm821_vm0  ;;  %vm836_vm4 = vweird.f32 %v1436_v2 }
 0x396   : > { %v817_v5 = vsub.f32 1.0, %v816_v3  ;;  %vm837_vm6 = vmor %vm835_vm5, %vm836_vm4 }
 0x397   : > { %v832_v6 = vsub.f32 1.0, %v831_v4 }
 0x398   : > { %v818_v38 = vmul.f32 %v1434_v1, %v817_v5 }
 0x399   : > { %v833_v47 = vmul.f32 %v1436_v2, %v832_v6 }
 0x39a   : > { %v819_v41 = vadd.f32 %v1434_v1, %v818_v38 }
 0x39b   : > { %v834_v57 = vadd.f32 %v1436_v2, %v833_v47  ;;  %v972_v47 = vld [vmem:[%s2390_s4] sm:$0xff] }
 0x39c   : > { %v823_v55 = vsel %vm822_vm2, %v1434_v1, %v819_v41 }
 0x39d   : > { %v828_v61 = vsel %vm825_vm3, %v827_v50, %v823_v55  ;;  %v838_v10 = vsel %vm837_vm6, %v1436_v2, %v834_v57 }
 0x39e   : > { %v846_v12 = vmul.f32 %v845_v63, %v828_v61  ;;  %v843_v15 = vsel %vm840_vm7, %v842_v11, %v838_v10 }
 0x39f   : > { %v849_v16 = vsub.f32 1.0, %v843_v15  ;;  %v851_v42 = vmul.f32 %v843_v15, %v2242_v59  ;;  %v858_v59 = vld [vmem:[%s2377_s29 + $0x8] sm:$0xff] }
 0x3a0   : > { %v847_v8 = vadd.f32 %v846_v12, %v744_v62 }
 0x3a2   : > { %1437 = vtanh.f32 %v847_v8 }
 0x3a8   : > { %v1438_v18 = vpop.eup %1437 }
 0x3a9   : > { %v850_v19 = vmul.f32 %v1438_v18, %v849_v16 }
 0x3ab   : > { %v2353_v21 = vadd.f32 %v851_v42, %v850_v19 }
 0x3ad   : > { %876 = vmatmul.f32.vlgmr.msrb.gmra.mxu3 %v2353_v21  ;;  %896 = vmatmul.f32.vlgmr.msra.gmra.mxu0 %v2353_v21 }
 0x3ae   : > { %916 = vmatmul.f32.vlgmr.msra.gmra.mxu1 %v2353_v21  ;;  %1130 = vmatpush.msrb.mxu3 %v2248_v51 }
 0x3b0   : > { %1131 = vmatpush.msrb.mxu3 %v2254_v58 }
 0x3b2   : > { %1132 = vmatpush.msrb.mxu3 %v2260_v44 }
 0x3b4   : > { %1133 = vmatpush.msrb.mxu3 %v2266_v60  ;;  %v857_v60 = vld [vmem:[%s2377_s29] sm:$0xff] }
 0x3b6   : > { %1134 = vmatpush.msrb.mxu3 %v2272_v54 }
 0x3b8   : > { %1135 = vmatpush.msrb.mxu3 %v2278_v52 }
 0x3ba   : > { %1136 = vmatpush.msrb.mxu3 %v2284_v56 }
 0x3bc   : > { %1137 = vmatpush.msrb.mxu3 %v2290_v49 }
 0x3be   : > { %1138 = vmatpush.msrb.mxu3 %v2296_v35 }
 0x3c0   : > { %1139 = vmatpush.msrb.mxu3 %v2302_v13 }
 0x3c2   : > { %1140 = vmatpush.msrb.mxu3 %v2308_v9 }
 0x3c4   : > { %1141 = vmatpush.msrb.mxu3 %v2314_v14 }
 0x3c6   : > { %1142 = vmatpush.msrb.mxu3 %v2320_v17 }
 0x3c8   : > { %1143 = vmatpush.msrb.mxu3 %v2326_v20 }
 0x3ca   : > { %1144 = vmatpush.msrb.mxu3 %v2332_v23 }
 0x3cc   : > { %1145 = vmatpush.msrb.mxu3 %v2338_v26 }
 0x42a   : > { %v897_v51 = vpop.f32.mrf.mxu0 }
 0x42b   : > { %v921_v58 = vadd.f32 %v897_v51, %v858_v59  ;;  %v917_v29 = vpop.f32.mrf.mxu1 }
 0x42c   : > { %v960_v33 = vadd.f32 %v2382_v32, %v917_v29 }
 0x42d   : > { %v1325_v44 = vmul.f32 -1.442695, %v921_v58 }
 0x42f   : > { %1439 = vpow2.f32 %v1325_v44 }
 0x430   : > { %v877_v54 = vpop.f32.mrf.mxu3 }
 0x431   : > { %v920_v52 = vadd.f32 %v877_v54, %v857_v60 }
 0x433   : > { %v1324_v56 = vmul.f32 -1.442695, %v920_v52  ;;  %v974_v52 = vld [vmem:[%s2390_s4 + $0x10] sm:$0xff] }
 0x435   : > { %v1440_v49 = vpop.eup %1439  ;;  %1441 = vpow2.f32 %v1324_v56 }
 0x436   : > { %v929_v35 = vadd.f32 1.0, %v1440_v49 }
 0x438   : > { %1443 = vrcp.f32 %v929_v35  ;;  %v956_v45 = vand.u32 2147483648, %v929_v35  ;;  %vm950_vm13 = vweird.f32 %v929_v35  ;;  %v954_v0 = vand.u32 2147483647, %v929_v35 }
 0x43a   : > { %v957_v3 = vor.u32 1.1754944e-38, %v956_v45  ;;  %vm955_vm15 = vcmp.eq.f32.partialorder %v954_v0, 8.507059e+37 }
 0x43b   : > { %v1442_v13 = vpop.eup %1441 }
 0x43c   : > { %v928_v9 = vadd.f32 1.0, %v1442_v13 }
 0x43e   : > { %1445 = vrcp.f32 %v928_v9  ;;  %v1444_v14 = vpop.eup %1443  ;;  %v941_v25 = vand.u32 2147483648, %v928_v9  ;;  %v939_v27 = vand.u32 2147483647, %v928_v9  ;;  %vm935_vm9 = vweird.f32 %v928_v9 }
 0x43f   : > { %v946_v17 = vmul.f32 %v1444_v14, %v929_v35  ;;  %vm951_vm12 = vweird.f32 %v1444_v14 }
 0x440   : > { %v942_v31 = vor.u32 1.1754944e-38, %v941_v25  ;;  %vm940_vm11 = vcmp.eq.f32.partialorder %v939_v27, 8.507059e+37  ;;  %vm952_vm14 = vmor %vm950_vm13, %vm951_vm12 }
 0x441   : > { %v947_v23 = vsub.f32 1.0, %v946_v17 }
 0x443   : > { %v948_v28 = vmul.f32 %v1444_v14, %v947_v23 }
 0x444   : > { %v1446_v20 = vpop.eup %1445 }
 0x445   : > { %v931_v22 = vmul.f32 %v1446_v20, %v928_v9  ;;  %vm936_vm8 = vweird.f32 %v1446_v20  ;;  %v949_v43 = vadd.f32 %v1444_v14, %v948_v28  ;;  %v1087_v28 = vld [vmem:[%s2399_s8] sm:$0xff] }
 0x446   : > { %vm937_vm10 = vmor %vm935_vm9, %vm936_vm8 }
 0x447   : > { %v932_v24 = vsub.f32 1.0, %v931_v22  ;;  %v953_v2 = vsel %vm952_vm14, %v1444_v14, %v949_v43 }
 0x448   : > { %v958_v4 = vsel %vm955_vm15, %v957_v3, %v953_v2 }
 0x449   : > { %v933_v26 = vmul.f32 %v1446_v20, %v932_v24  ;;  %v964_v5 = vsub.f32 1.0, %v958_v4  ;;  %v966_v38 = vmul.f32 %v958_v4, %v2353_v21 }
 0x44b   : > { %v934_v30 = vadd.f32 %v1446_v20, %v933_v26 }
 0x44d   : > { %v938_v34 = vsel %vm937_vm10, %v1446_v20, %v934_v30 }
 0x44e   : > { %v943_v40 = vsel %vm940_vm11, %v942_v31, %v938_v34 }
 0x44f   : > { %v961_v46 = vmul.f32 %v960_v33, %v943_v40  ;;  %v1088_v33 = vld [vmem:[%s2399_s8 + $0x8] sm:$0xff] }
 0x451   : > { %v962_v1 = vadd.f32 %v961_v46, %v859_v37 }
 0x453   : > { %1447 = vtanh.f32 %v962_v1 }
 0x459   : > { %v1448_v6 = vpop.eup %1447 }
 0x45a   : > { %v965_v7 = vmul.f32 %v1448_v6, %v964_v5 }
 0x45c   : > { %v967_v39 = vadd.f32 %v966_v38, %v965_v7 }
 0x45e   : > { %991 = vmatmul.f32.vlgmr.msra.gmra.mxu2 %v967_v39  ;;  %1011 = vmatmul.f32.vlgmr.msra.gmra.mxu3 %v967_v39 }
 0x45f   : > { %1031 = vmatmul.f32.vlgmr.msrb.gmra.mxu0 %v967_v39 }
 0x4dc   : > { %v1032_v59 = vpop.f32.mrf.mxu0 }
 0x4dd   : > { %v1075_v60 = vadd.f32 %v2382_v32, %v1032_v59 }
 0x4e1   : > { %v992_v41 = vpop.f32.mrf.mxu2  ;;  %v1012_v50 = vpop.f32.mrf.mxu3 }
 0x4e2   : > { %v1035_v55 = vadd.f32 %v992_v41, %v972_v47  ;;  %v1036_v63 = vadd.f32 %v1012_v50, %v973_v48 }
 0x4e4   : > { %v1327_v62 = vmul.f32 -1.442695, %v1035_v55  ;;  %v1328_v61 = vmul.f32 -1.442695, %v1036_v63  ;;  %v1089_v63 = vld [vmem:[%s2399_s8 + $0x10] sm:$0xff] }
 0x4e6   : > { %1449 = vpow2.f32 %v1327_v62 }
 0x4e7   : > { %1451 = vpow2.f32 %v1328_v61 }
 0x4ec   : > { %v1450_v57 = vpop.eup %1449 }
 0x4ed   : > { %v1452_v12 = vpop.eup %1451  ;;  %v1043_v53 = vadd.f32 1.0, %v1450_v57 }
 0x4ee   : > { %v1044_v36 = vadd.f32 1.0, %v1452_v12 }
 0x4ef   : > { %1453 = vrcp.f32 %v1043_v53  ;;  %v1056_v18 = vand.u32 2147483648, %v1043_v53  ;;  %v1054_v21 = vand.u32 2147483647, %v1043_v53  ;;  %vm1050_vm1 = vweird.f32 %v1043_v53 }
 0x4f0   : > { %1455 = vrcp.f32 %v1044_v36  ;;  %v1071_v13 = vand.u32 2147483648, %v1044_v36  ;;  %vm1065_vm5 = vweird.f32 %v1044_v36  ;;  %v1069_v9 = vand.u32 2147483647, %v1044_v36 }
 0x4f1   : > { %v1057_v44 = vor.u32 1.1754944e-38, %v1056_v18  ;;  %vm1055_vm3 = vcmp.eq.f32.partialorder %v1054_v21, 8.507059e+37 }
 0x4f2   : > { %v1072_v20 = vor.u32 1.1754944e-38, %v1071_v13  ;;  %vm1070_vm7 = vcmp.eq.f32.partialorder %v1069_v9, 8.507059e+37 }
 0x4f5   : > { %v1454_v8 = vpop.eup %1453 }
 0x4f6   : > { %v1456_v10 = vpop.eup %1455  ;;  %v1046_v11 = vmul.f32 %v1454_v8, %v1043_v53  ;;  %vm1051_vm0 = vweird.f32 %v1454_v8 }
 0x4f7   : > { %v1061_v15 = vmul.f32 %v1456_v10, %v1044_v36  ;;  %vm1052_vm2 = vmor %vm1050_vm1, %vm1051_vm0  ;;  %vm1066_vm4 = vweird.f32 %v1456_v10 }
 0x4f8   : > { %v1047_v16 = vsub.f32 1.0, %v1046_v11  ;;  %vm1067_vm6 = vmor %vm1065_vm5, %vm1066_vm4 }
 0x4f9   : > { %v1062_v19 = vsub.f32 1.0, %v1061_v15 }
 0x4fa   : > { %v1048_v42 = vmul.f32 %v1454_v8, %v1047_v16 }
 0x4fb   : > { %v1063_v51 = vmul.f32 %v1456_v10, %v1062_v19 }
 0x4fc   : > { %v1049_v58 = vadd.f32 %v1454_v8, %v1048_v42 }
 0x4fd   : > { %v1064_v49 = vadd.f32 %v1456_v10, %v1063_v51 }
 0x4fe   : > { %v1053_v54 = vsel %vm1052_vm2, %v1454_v8, %v1049_v58 }
 0x4ff   : > { %v1058_v56 = vsel %vm1055_vm3, %v1057_v44, %v1053_v54  ;;  %v1068_v17 = vsel %vm1067_vm6, %v1456_v10, %v1064_v49 }
 0x500   : > { %v1076_v35 = vmul.f32 %v1075_v60, %v1058_v56  ;;  %v1073_v22 = vsel %vm1070_vm7, %v1072_v20, %v1068_v17 }
 0x501   : > { %v1079_v23 = vsub.f32 1.0, %v1073_v22  ;;  %v1081_v26 = vmul.f32 %v1073_v22, %v967_v39 }
 0x502   : > { %v1077_v14 = vadd.f32 %v1076_v35, %v974_v52 }
 0x504   : > { %1457 = vtanh.f32 %v1077_v14 }
 0x50a   : > { %v1458_v24 = vpop.eup %1457 }
 0x50b   : > { %v1080_v25 = vmul.f32 %v1458_v24, %v1079_v23 }
 0x50d   : > { %v1082_v27 = vadd.f32 %v1081_v26, %v1080_v25 }
 0x50f   : > { %1106 = vmatmul.f32.vlgmr.msrb.gmra.mxu1 %v1082_v27  ;;  %1126 = vmatmul.f32.vlgmr.msrb.gmra.mxu2 %v1082_v27 }
 0x510   : > { %1146 = vmatmul.f32.vlgmr.msrb.gmra.mxu3 %v1082_v27 }
 0x58c   : > { %v1107_v29 = vpop.f32.mrf.mxu1 }
 0x58d   : > { %v1150_v30 = vadd.f32 %v1107_v29, %v1087_v28 }
 0x58f   : > { %v1330_v31 = vmul.f32 -1.442695, %v1150_v30 }
 0x591   : > { %1459 = vpow2.f32 %v1330_v31 }
 0x592   : > { %v1127_v34 = vpop.f32.mrf.mxu2 }
 0x593   : > { %v1151_v37 = vadd.f32 %v1127_v34, %v1088_v33  ;;  %v1147_v38 = vpop.f32.mrf.mxu3 }
 0x594   : > { %v1190_v55 = vadd.f32 %v2382_v32, %v1147_v38 }
 0x595   : > { %v1331_v40 = vmul.f32 -1.442695, %v1151_v37 }
 0x597   : > { %v1460_v43 = vpop.eup %1459  ;;  %1461 = vpow2.f32 %v1331_v40 }
 0x598   : > { %v1158_v45 = vadd.f32 1.0, %v1460_v43 }
 0x59a   : > { %1463 = vrcp.f32 %v1158_v45  ;;  %v1171_v4 = vand.u32 2147483648, %v1158_v45  ;;  %v1169_v6 = vand.u32 2147483647, %v1158_v45  ;;  %vm1165_vm9 = vweird.f32 %v1158_v45 }
 0x59c   : > { %v1172_v48 = vor.u32 1.1754944e-38, %v1171_v4  ;;  %vm1170_vm11 = vcmp.eq.f32.partialorder %v1169_v6, 8.507059e+37 }
 0x59d   : > { %v1462_v46 = vpop.eup %1461 }
 0x59e   : > { %v1159_v0 = vadd.f32 1.0, %v1462_v46 }
 0x5a0   : > { %v1464_v1 = vpop.eup %1463  ;;  %1465 = vrcp.f32 %v1159_v0  ;;  %v1186_v57 = vand.u32 2147483648, %v1159_v0  ;;  %v1184_v53 = vand.u32 2147483647, %v1159_v0  ;;  %vm1180_vm13 = vweird.f32 %v1159_v0 }
 0x5a1   : > { %v1161_v2 = vmul.f32 %v1464_v1, %v1158_v45  ;;  %vm1166_vm8 = vweird.f32 %v1464_v1 }
 0x5a2   : > { %vm1167_vm10 = vmor %vm1165_vm9, %vm1166_vm8  ;;  %v1187_v10 = vor.u32 1.1754944e-38, %v1186_v57  ;;  %vm1185_vm15 = vcmp.eq.f32.partialorder %v1184_v53, 8.507059e+37 }
 0x5a3   : > { %v1162_v3 = vsub.f32 1.0, %v1161_v2 }
 0x5a5   : > { %v1163_v5 = vmul.f32 %v1464_v1, %v1162_v3 }
 0x5a6   : > { %v1466_v7 = vpop.eup %1465 }
 0x5a7   : > { %v1176_v39 = vmul.f32 %v1466_v7, %v1159_v0  ;;  %v1164_v47 = vadd.f32 %v1464_v1, %v1163_v5  ;;  %vm1181_vm12 = vweird.f32 %v1466_v7 }
 0x5a8   : > { %vm1182_vm14 = vmor %vm1180_vm13, %vm1181_vm12 }
 0x5a9   : > { %v1177_v41 = vsub.f32 1.0, %v1176_v39  ;;  %v1168_v50 = vsel %vm1167_vm10, %v1464_v1, %v1164_v47 }
 0x5aa   : > { %v1173_v62 = vsel %vm1170_vm11, %v1172_v48, %v1168_v50 }
 0x5ab   : > { %v1178_v61 = vmul.f32 %v1466_v7, %v1177_v41  ;;  %v1191_v12 = vmul.f32 %v1190_v55, %v1173_v62 }
 0x5ad   : > { %v1179_v36 = vadd.f32 %v1466_v7, %v1178_v61  ;;  %v1192_v8 = vadd.f32 %v1191_v12, %v1089_v63 }
 0x5af   : > { %v1183_v11 = vsel %vm1182_vm14, %v1466_v7, %v1179_v36  ;;  %1467 = vtanh.f32 %v1192_v8 }
 0x5b0   : > { %v1188_v15 = vsel %vm1185_vm15, %v1187_v10, %v1183_v11 }
 0x5b1   : > { %v1194_v16 = vsub.f32 1.0, %v1188_v15  ;;  %v1196_v19 = vmul.f32 %v1188_v15, %v1082_v27 }
 0x5b5   : > { %v1468_v32 = vpop.eup %1467 }
 0x5b6   : > { %v1195_v18 = vmul.f32 %v1468_v32, %v1194_v16 }
 0x5b8   : > { %v1197_v42 = vadd.f32 %v1196_v19, %v1195_v18 }
 0x5ba   : > { %1198 = vst [vmem:[%s224_s10] sm:$0xff] %v1197_v42 }
 0x5bb PF: > { %p13_p5 = scmp.ge.s32.totalorder %s1629_s17, 4   ;;  %s2467_s12 = smov %s1574_s13 }
 0x5bc   : > { %s2468_s13 = smov %s1578_s14  ;;  %s2469_s14 = smov %s1639_s20 }
 0x5bd   : > { %s2470_s15 = smov %s1629_s17  ;;  %15 = sbr.rel (!%p13_p5) target bundleno = 3 (0x3), region = 86 }
 0x5c2   :  { %1218 = vsyncpa [#allocation3], 1 }
 0x5c3   :  { %1220 = vsyncpa [#allocation3 + $0x1], 1 }

</bundles_post_ra>
